<compile_context>
chip_gen: v6e
topology: v6e:2x2x1
jax: 0.10.0
libtpu: 0.0.40
codegen_flags: <defaults>
</compile_context>

<pallas_src>
import numpy as np
import jax
import jax.numpy as jnp
from jax.experimental import pallas as pl
from jax.experimental.pallas import tpu as pltpu

# ----------------------------- config (args_spec) -----------------------------
SR = 16000
N_FFT = 64
HOP = 32
N_MELS = 32
FMIN, FMAX = 20.0, 8000.0
N_CLASSES = 8
AMIN = 1e-10
BN_EPS = 1e-5
GEM_P = 3.0
GEM_EPS = 1e-6
C1 = 16                                  # backbone stage-1 channels
C2 = 32                                  # stage-2 channels == final_in_features
FREQ_BINS = N_FFT // 2 + 1               # 33
FPR = 4                                  # frames packed per 128-lane row
LANE = 128
HO1 = (N_MELS + 2 - 3) // 2 + 1          # 16 (conv over H = mel, fixed)
HO2 = (HO1 + 2 - 3) // 2 + 1             # 8
LOG10_SCALE = 10.0 / float(np.log(10.0))


# ----------------------------- Pallas kernels ---------------------------------
def spec_logmel_bn_kernel(frames_ref, wpack_ref, fb_ref, scale_ref, shift_ref, o_ref):
    """Fused STFT power -> mel -> power_to_db -> eval BatchNorm, 4 frames per row.

    frames: (1, tile_p, 4*n_fft) bf16   wpack: (4*n_fft, 4*128) bf16 block-diag DFT
    fb    : (4*128, 128) bf16 block-diag mel   scale/shift: (1, 128) f32 (bn0 x4)
    out   : (1, tile_p, 128) f32  -- lane-dense (frame s, mel m) at lane 32*s+m
    """
    f = frames_ref[0]                                                     # (tile_p, 256)
    y = jnp.dot(f, wpack_ref[...], preferred_element_type=jnp.float32)    # (tile_p, 512)
    z = (y * y).astype(fb_ref.dtype)                                      # power, stays on-chip
    mel = jnp.dot(z, fb_ref[...], preferred_element_type=jnp.float32)     # (tile_p, 128)
    logmel = LOG10_SCALE * jnp.log(jnp.maximum(mel, AMIN))                # ref=1, top_db=None
    o_ref[0] = logmel * scale_ref[...] + shift_ref[...]                   # eval-mode bn0


def make_backbone_head_kernel(wo1, wo2):
    """Fused backbone (2x conv3x3/s2 + ReLU) + GeM(p=3) + ReLU + Linear; one batch/step.

    Each conv = 3 per-kw pairs of bf16 matmuls: 0/1 width-gather (W padding) then a
    combined (H-taps x Cin -> Hout*Cout) weight matmul (H padding), f32 accumulation.
    Data layout throughout: rows = width (time), lanes = Hout*Cout.
    """
    inv_hw = 1.0 / float(wo2 * HO2)

    def kernel(x_ref, sw1_ref, w1c_ref, b1e_ref, sw2_ref, w2c_ref, b2e_ref,
               pool_ref, fcw_ref, fcb_ref, o_ref):
        a = x_ref[0].astype(jnp.bfloat16)                                 # (T_pad, n_mels)

        # --- conv1 (cin=1): (wo1, T_pad)@(T_pad, 32) then (wo1, 32)@(32, HO1*C1)
        y1 = None
        for kw in range(3):
            g = jnp.dot(sw1_ref[kw], a, preferred_element_type=jnp.float32)
            t = jnp.dot(g.astype(jnp.bfloat16), w1c_ref[kw],
                        preferred_element_type=jnp.float32)               # (wo1, HO1*C1)
            y1 = t if y1 is None else y1 + t
        y1 = jnp.maximum(y1 + b1e_ref[...], 0.0).astype(jnp.bfloat16)

        # --- conv2: (wo2, wo1)@(wo1, HO1*C1) then (wo2, HO1*C1)@(HO1*C1, HO2*C2)
        y2 = None
        for kw in range(3):
            g = jnp.dot(sw2_ref[kw], y1, preferred_element_type=jnp.float32)
            t = jnp.dot(g.astype(jnp.bfloat16), w2c_ref[kw],
                        preferred_element_type=jnp.float32)               # (wo2, HO2*C2)
            y2 = t if y2 is None else y2 + t
        y2 = jnp.maximum(y2 + b2e_ref[...], 0.0)

        # --- GeM(p=3) over spatial -> ReLU -> Dropout(eval: id) -> Linear
        yc = jnp.maximum(y2, GEM_EPS)
        s = jnp.sum(yc * yc * yc, axis=0, keepdims=True)                  # (1, HO2*C2)
        m = jnp.dot(s, pool_ref[...], preferred_element_type=jnp.float32) * inv_hw  # (1, C2)
        feat = jnp.maximum(jnp.exp(jnp.log(m) * (1.0 / GEM_P)), 0.0)
        o_ref[0] = jnp.dot(feat, fcw_ref[...],
                           preferred_element_type=jnp.float32) + fcb_ref[...]       # (1, n_cls)

    return kernel


# ----------------------------- framing / tiling --------------------------------
def frame_signal(x, n_frames, t_pad):
    """center=True, reflect pad n_fft//2 (torchlibrosa Spectrogram); pad frames to t_pad."""
    pad = N_FFT // 2
    xp = jnp.pad(x, ((0, 0), (pad, pad)), mode="reflect")
    lp = xp.shape[1]
    if N_FFT == 2 * HOP and lp % HOP == 0:
        blocks = xp.reshape(x.shape[0], lp // HOP, HOP)
        frames = jnp.concatenate([blocks[:, :n_frames], blocks[:, 1:n_frames + 1]], axis=-1)
    else:
        patches = jax.lax.conv_general_dilated_patches(xp[:, None, :], (N_FFT,), (HOP,), "VALID")
        frames = jnp.transpose(patches, (0, 2, 1))
    return jnp.pad(frames, ((0, 0), (0, t_pad - n_frames), (0, 0)))        # (B, t_pad, n_fft)


def _time_tiling(n_frames, n_batch, target_packed=256):
    """Packed-row (4 frames/row) tiling: >= 2 total grid steps when possible, tile<=target."""
    p = -(-n_frames // FPR)
    if p <= target_packed:
        if n_batch >= 2 or p <= 8:
            tile_p, n_tiles = p, 1              # B>=2 already gives >=2 parallel steps
        else:
            tile_p = (-(-p // 2) + 7) // 8 * 8  # split single-batch work across 2 steps
            n_tiles = 2
    else:
        tile_p = target_packed
        n_tiles = -(-p // tile_p)
    return FPR * tile_p * n_tiles, tile_p, n_tiles


# ----------------------------- constant builders (numpy) -----------------------
def hann_dft_pack4():
    n = np.arange(N_FFT)
    win = 0.5 - 0.5 * np.cos(2.0 * np.pi * n / N_FFT)            # periodic hann
    f = np.arange(FREQ_BINS)
    ang = 2.0 * np.pi * np.outer(n, f) / N_FFT
    base = np.zeros((N_FFT, LANE), np.float32)
    base[:, :FREQ_BINS] = win[:, None] * np.cos(ang)
    base[:, FREQ_BINS:2 * FREQ_BINS] = -win[:, None] * np.sin(ang)
    pack = np.zeros((FPR * N_FFT, FPR * LANE), np.float32)        # (256, 512) block-diag
    for s in range(FPR):
        pack[s * N_FFT:(s + 1) * N_FFT, s * LANE:(s + 1) * LANE] = base
    return pack


def mel_filterbank_np():
    def hz_to_mel(f): return 2595.0 * np.log10(1.0 + f / 700.0)
    def mel_to_hz(m): return 700.0 * (10.0 ** (m / 2595.0) - 1.0)
    freqs = np.linspace(0.0, SR / 2.0, FREQ_BINS)
    mel_pts = np.linspace(hz_to_mel(FMIN), hz_to_mel(FMAX), N_MELS + 2)
    hz = mel_to_hz(mel_pts)
    fb = np.zeros((FREQ_BINS, N_MELS), np.float32)
    for m in range(N_MELS):
        lo, c, hi = hz[m], hz[m + 1], hz[m + 2]
        up = (freqs - lo) / max(c - lo, 1e-9)
        dn = (hi - freqs) / max(hi - c, 1e-9)
        fb[:, m] = np.maximum(0.0, np.minimum(up, dn))
    return fb


def mel_fb_pack4():
    fb = mel_filterbank_np()
    blk = np.zeros((LANE, N_MELS), np.float32)
    blk[:FREQ_BINS] = fb                        # re^2 contribution
    blk[FREQ_BINS:2 * FREQ_BINS] = fb           # im^2 contribution
    pack = np.zeros((FPR * LANE, FPR * N_MELS), np.float32)       # (512, 128) block-diag
    for s in range(FPR):
        pack[s * LANE:(s + 1) * LANE, s * N_MELS:(s + 1) * N_MELS] = blk
    return pack


def width_gather(w_valid, w_padded, w_out, ksize=3, stride=2, pad=1):
    """0/1 per-kw width (time) gather: S[kw, wo, wi] = 1 iff wi == stride*wo+kw-pad, in range."""
    S = np.zeros((ksize, w_out, w_padded), np.float32)
    for kw in range(ksize):
        for wo in range(w_out):
            wi = stride * wo + kw - pad
            if 0 <= wi < w_valid:
                S[kw, wo, wi] = 1.0
    return S


def conv1_combined(w1):
    """w1 (kh, kw, c1) -> per-kw combined weight (3, n_mels, HO1*C1): folds H taps + padding."""
    W = np.zeros((3, N_MELS, HO1 * C1), np.float32)
    for kw in range(3):
        for ho in range(HO1):
            for kh in range(3):
                mel = 2 * ho + kh - 1
                if 0 <= mel < N_MELS:
                    W[kw, mel, ho * C1:(ho + 1) * C1] = w1[kh, kw]
    return W


def conv2_combined(w2):
    """w2 (kh, kw, c1, c2) -> per-kw combined weight (3, HO1*C1, HO2*C2)."""
    W = np.zeros((3, HO1 * C1, HO2 * C2), np.float32)
    for kw in range(3):
        for ho in range(HO2):
            for kh in range(3):
                h1 = 2 * ho + kh - 1
                if 0 <= h1 < HO1:
                    W[kw, h1 * C1:(h1 + 1) * C1, ho * C2:(ho + 1) * C2] = w2[kh, kw]
    return W


# ----------------------------- deterministic parameters ------------------------
def init_params(seed=0):
    rng = np.random.default_rng(seed)
    # bn0 (BatchNorm2d over mel bins), eval mode -> per-mel affine, tiled x4 (4 frames / row)
    gamma = (1.0 + 0.1 * rng.standard_normal(N_MELS)).astype(np.float32)
    beta = (0.1 * rng.standard_normal(N_MELS)).astype(np.float32)
    rmean = (0.1 * rng.standard_normal(N_MELS)).astype(np.float32)
    rvar = (1.0 + 0.05 * rng.random(N_MELS)).astype(np.float32)
    scale = gamma / np.sqrt(rvar + BN_EPS)
    shift = beta - rmean * scale
    # backbone stand-in conv weights (kh, kw, [cin,] cout) + head
    w1 = (0.1 * rng.standard_normal((3, 3, C1))).astype(np.float32)
    b1 = (0.05 * rng.standard_normal(C1)).astype(np.float32)
    w2 = (0.1 * rng.standard_normal((3, 3, C1, C2))).astype(np.float32)
    b2 = (0.05 * rng.standard_normal(C2)).astype(np.float32)
    fcw = (0.05 * rng.standard_normal((C2, N_CLASSES))).astype(np.float32)
    fcb = np.zeros((1, N_CLASSES), np.float32)
    return {
        "wpack4": jnp.asarray(hann_dft_pack4(), jnp.bfloat16),
        "fb4": jnp.asarray(mel_fb_pack4(), jnp.bfloat16),
        "bn_scale4": jnp.asarray(np.tile(scale, FPR).reshape(1, LANE)),
        "bn_shift4": jnp.asarray(np.tile(shift, FPR).reshape(1, LANE)),
        "w1c": jnp.asarray(conv1_combined(w1), jnp.bfloat16),
        "b1e": jnp.asarray(np.tile(b1, HO1).reshape(1, HO1 * C1)),
        "w2c": jnp.asarray(conv2_combined(w2), jnp.bfloat16),
        "b2e": jnp.asarray(np.tile(b2, HO2).reshape(1, HO2 * C2)),
        "pool": jnp.asarray(np.tile(np.eye(C2, dtype=np.float32), (HO2, 1))),   # (HO2*C2, C2)
        "fc_w": jnp.asarray(fcw),
        "fc_b": jnp.asarray(fcb),
    }


# ----------------------------- forward pass -------------------------------------
def custom_model_forward(x, params, is_train=False):
    B, L = x.shape
    pad = N_FFT // 2
    T = (L + 2 * pad - N_FFT) // HOP + 1
    T_pad, tile_p, n_t = _time_tiling(T, B)
    Pp = T_pad // FPR

    frames = frame_signal(x, T, T_pad)                                   # (B, T_pad, n_fft)
    frames = frames.reshape(B, Pp, FPR * N_FFT).astype(jnp.bfloat16)     # 4 frames / row

    # ---- Pallas call #1: fused Spectrogram + LogmelFilterBank + bn0 (lane-dense, parallel)
    flops1 = 2 * B * Pp * (FPR * N_FFT * FPR * LANE + FPR * LANE * LANE)
    bytes1 = (B * Pp * (FPR * N_FFT * 2 + LANE * 4)
              + 2 * (FPR * N_FFT * FPR * LANE + FPR * LANE * LANE) + 8 * LANE)
    logmel_packed = pl.pallas_call(
        spec_logmel_bn_kernel,
        grid=(B, n_t),
        in_specs=[
            pl.BlockSpec((1, tile_p, FPR * N_FFT), lambda b, i: (b, i, 0)),
            pl.BlockSpec((FPR * N_FFT, FPR * LANE), lambda b, i: (0, 0)),
            pl.BlockSpec((FPR * LANE, LANE), lambda b, i: (0, 0)),
            pl.BlockSpec((1, LANE), lambda b, i: (0, 0)),
            pl.BlockSpec((1, LANE), lambda b, i: (0, 0)),
        ],
        out_specs=pl.BlockSpec((1, tile_p, LANE), lambda b, i: (b, i, 0)),
        out_shape=jax.ShapeDtypeStruct((B, Pp, LANE), jnp.float32),
        compiler_params=pltpu.CompilerParams(dimension_semantics=("parallel", "parallel")),
        cost_estimate=pl.CostEstimate(flops=flops1, transcendentals=B * Pp * LANE,
                                      bytes_accessed=bytes1),
    )(frames, params["wpack4"], params["fb4"], params["bn_scale4"], params["bn_shift4"])

    if is_train:
        pass  # TODO(synk): SpecAugmentation / GaussianBlur are train-only; eval path exercised here.

    # free contiguous reshape (no transpose / patch-extraction glue between the two calls):
    # rows t >= T are padding and are never selected by the in-kernel width gathers.
    logmel = logmel_packed.reshape(B, T_pad, N_MELS)

    # image after .transpose(2,3) is (H=n_mels, W=T); width-direction gathers depend on T only
    wo1 = (T + 2 - 3) // 2 + 1
    wo2 = (wo1 + 2 - 3) // 2 + 1
    sw1 = jnp.asarray(width_gather(T, T_pad, wo1), jnp.bfloat16)         # (3, wo1, T_pad)
    sw2 = jnp.asarray(width_gather(wo1, wo1, wo2), jnp.bfloat16)         # (3, wo2, wo1)

    def _full(a):
        nd = a.ndim
        return pl.BlockSpec(tuple(a.shape), lambda b, _n=nd: (0,) * _n)

    flops2 = 2 * B * (3 * (wo1 * T_pad * N_MELS + wo1 * N_MELS * HO1 * C1)
                      + 3 * (wo2 * wo1 * HO1 * C1 + wo2 * HO1 * C1 * HO2 * C2)
                      + HO2 * C2 * C2 + C2 * N_CLASSES)
    bytes2 = (B * (T_pad * N_MELS * 4 + N_CLASSES * 4)
              + 2 * (int(sw1.size) + int(sw2.size)
                     + int(params["w1c"].size) + int(params["w2c"].size))
              + 4 * (int(params["b1e"].size) + int(params["b2e"].size)
                     + int(params["pool"].size) + int(params["fc_w"].size)
                     + int(params["fc_b"].size)))

    # ---- Pallas call #2: fused conv1+conv2 backbone + GeM + ReLU + Dropout(id) + Linear
    out = pl.pallas_call(
        make_backbone_head_kernel(wo1, wo2),
        grid=(B,),
        in_specs=[pl.BlockSpec((1, T_pad, N_MELS), lambda b: (b, 0, 0)),
                  _full(sw1), _full(params["w1c"]), _full(params["b1e"]),
                  _full(sw2), _full(params["w2c"]), _full(params["b2e"]),
                  _full(params["pool"]), _full(params["fc_w"]), _full(params["fc_b"])],
        out_specs=pl.BlockSpec((1, 1, N_CLASSES), lambda b: (b, 0, 0)),
        out_shape=jax.ShapeDtypeStruct((B, 1, N_CLASSES), jnp.float32),
        compiler_params=pltpu.CompilerParams(dimension_semantics=("parallel",)),
        cost_estimate=pl.CostEstimate(flops=flops2, transcendentals=2 * B * C2,
                                      bytes_accessed=bytes2),
    )(logmel, sw1, params["w1c"], params["b1e"], sw2, params["w2c"], params["b2e"],
      params["pool"], params["fc_w"], params["fc_b"])

    return out.reshape(B, N_CLASSES)


# ----------------------------- main ---------------------------------------------
if __name__ == "__main__":
    B, L = 2, 512                                       # small raw-audio batch
    x = jax.random.normal(jax.random.PRNGKey(0), (B, L), jnp.float32)
    params = init_params(seed=0)

    fwd = jax.jit(lambda xx: custom_model_forward(xx, params, is_train=False))
    out = jax.block_until_ready(fwd(x))
    assert out.shape == (B, N_CLASSES) and out.dtype == jnp.float32
    assert bool(jnp.all(jnp.isfinite(out)))
    print("KERNEL_OK")
</pallas_src>

<mosaic_0001>
module attributes {stable_mosaic.version = 11 : i64} {
  func.func @spec_logmel_bn_kernel(%arg0: i32, %arg1: i32, %arg2: memref<1x5x256xbf16, #tpu.memory_space<vmem>>, %arg3: memref<256x512xbf16, #tpu.memory_space<vmem>>, %arg4: memref<512x128xbf16, #tpu.memory_space<vmem>>, %arg5: memref<1x128xf32, #tpu.memory_space<vmem>>, %arg6: memref<1x128xf32, #tpu.memory_space<vmem>>, %arg7: memref<1x5x128xf32, #tpu.memory_space<vmem>>) attributes {dimension_semantics = [#tpu.dimension_semantics<parallel>, #tpu.dimension_semantics<parallel>], iteration_bounds = array<i64: 2, 1>, scalar_prefetch = 0 : i64, scratch_operands = 0 : i64, tpu.core_type = #tpu.core_type<tc>, window_params = [{transform_indices = @transform_0, window_bounds = array<i64: 1, 5, 256>}, {pipeline_mode = #tpu.pipeline_mode<synchronous>, transform_indices = @transform_1, window_bounds = array<i64: 256, 512>}, {pipeline_mode = #tpu.pipeline_mode<synchronous>, transform_indices = @transform_2, window_bounds = array<i64: 512, 128>}, {pipeline_mode = #tpu.pipeline_mode<synchronous>, transform_indices = @transform_3, window_bounds = array<i64: 1, 128>}, {pipeline_mode = #tpu.pipeline_mode<synchronous>, transform_indices = @transform_4, window_bounds = array<i64: 1, 128>}, {transform_indices = @transform_5, window_bounds = array<i64: 1, 5, 128>}]} {
    %c0 = arith.constant 0 : index
    %c0_0 = arith.constant 0 : index
    %c0_1 = arith.constant 0 : index
    %0 = vector.load %arg2[%c0, %c0_0, %c0_1] : memref<1x5x256xbf16, #tpu.memory_space<vmem>>, vector<1x5x256xbf16>
    %1 = vector.shape_cast %0 : vector<1x5x256xbf16> to vector<5x256xbf16>
    %c0_2 = arith.constant 0 : index
    %c0_3 = arith.constant 0 : index
    %2 = vector.load %arg3[%c0_2, %c0_3] : memref<256x512xbf16, #tpu.memory_space<vmem>>, vector<256x512xbf16>
    %cst = arith.constant dense<0.000000e+00> : vector<5x512xf32>
    %3 = tpu.matmul %1, %2, %cst {dimension_numbers = #tpu.dot_dimension_numbers<[1], [0], [0], [1], [0, 0, 1, 1], [], []>} : vector<5x256xbf16>, vector<256x512xbf16>, vector<5x512xf32> -> vector<5x512xf32>
    %4 = arith.mulf %3, %3 : vector<5x512xf32>
    %5 = arith.truncf %4 : vector<5x512xf32> to vector<5x512xbf16>
    %c0_4 = arith.constant 0 : index
    %c0_5 = arith.constant 0 : index
    %6 = vector.load %arg4[%c0_4, %c0_5] : memref<512x128xbf16, #tpu.memory_space<vmem>>, vector<512x128xbf16>
    %cst_6 = arith.constant dense<0.000000e+00> : vector<5x128xf32>
    %7 = tpu.matmul %5, %6, %cst_6 {dimension_numbers = #tpu.dot_dimension_numbers<[1], [0], [0], [1], [0, 0, 1, 1], [], []>} : vector<5x512xbf16>, vector<512x128xbf16>, vector<5x128xf32> -> vector<5x128xf32>
    %cst_7 = arith.constant 1.000000e-10 : f32
    %8 = vector.broadcast %cst_7 : f32 to vector<5x128xf32>
    %9 = arith.maximumf %7, %8 : vector<5x128xf32>
    %10 = math.log %9 : vector<5x128xf32>
    %cst_8 = arith.constant 4.34294462 : f32
    %11 = vector.broadcast %cst_8 : f32 to vector<5x128xf32>
    %12 = arith.mulf %11, %10 : vector<5x128xf32>
    %c0_9 = arith.constant 0 : index
    %c0_10 = arith.constant 0 : index
    %13 = vector.load %arg5[%c0_9, %c0_10] : memref<1x128xf32, #tpu.memory_space<vmem>>, vector<1x128xf32>
    %14 = vector.broadcast %13 : vector<1x128xf32> to vector<5x128xf32>
    %15 = arith.mulf %12, %14 : vector<5x128xf32>
    %c0_11 = arith.constant 0 : index
    %c0_12 = arith.constant 0 : index
    %16 = vector.load %arg6[%c0_11, %c0_12] : memref<1x128xf32, #tpu.memory_space<vmem>>, vector<1x128xf32>
    %17 = vector.broadcast %16 : vector<1x128xf32> to vector<5x128xf32>
    %18 = arith.addf %15, %17 : vector<5x128xf32>
    %c0_13 = arith.constant 0 : index
    %c0_14 = arith.constant 0 : index
    %c0_15 = arith.constant 0 : index
    %19 = vector.load %arg7[%c0_13, %c0_14, %c0_15] : memref<1x5x128xf32, #tpu.memory_space<vmem>>, vector<1x5x128xf32>
    %20 = vector.shape_cast %19 : vector<1x5x128xf32> to vector<5x128xf32>
    %21 = vector.shape_cast %18 : vector<5x128xf32> to vector<1x5x128xf32>
    tpu.vector_store %arg7[%c0_13, %c0_14, %c0_15], %21 {strides = array<i32>} : memref<1x5x128xf32, #tpu.memory_space<vmem>>, vector<1x5x128xf32>,
    return
  }
  func.func @transform_0(%arg0: i32, %arg1: i32) -> (i32, i32, i32) {
    %c0_i32 = arith.constant 0 : i32
    %c0_i32_0 = arith.constant 0 : i32
    return %arg0, %arg1, %c0_i32 : i32, i32, i32
  }
  func.func @transform_1(%arg0: i32, %arg1: i32) -> (i32, i32) {
    %c0_i32 = arith.constant 0 : i32
    %c0_i32_0 = arith.constant 0 : i32
    %c0_i32_1 = arith.constant 0 : i32
    return %c0_i32, %c0_i32_0 : i32, i32
  }
  func.func @transform_2(%arg0: i32, %arg1: i32) -> (i32, i32) {
    %c0_i32 = arith.constant 0 : i32
    %c0_i32_0 = arith.constant 0 : i32
    %c0_i32_1 = arith.constant 0 : i32
    return %c0_i32, %c0_i32_0 : i32, i32
  }
  func.func @transform_3(%arg0: i32, %arg1: i32) -> (i32, i32) {
    %c0_i32 = arith.constant 0 : i32
    %c0_i32_0 = arith.constant 0 : i32
    %c0_i32_1 = arith.constant 0 : i32
    return %c0_i32, %c0_i32_0 : i32, i32
  }
  func.func @transform_4(%arg0: i32, %arg1: i32) -> (i32, i32) {
    %c0_i32 = arith.constant 0 : i32
    %c0_i32_0 = arith.constant 0 : i32
    %c0_i32_1 = arith.constant 0 : i32
    return %c0_i32, %c0_i32_0 : i32, i32
  }
  func.func @transform_5(%arg0: i32, %arg1: i32) -> (i32, i32, i32) {
    %c0_i32 = arith.constant 0 : i32
    %c0_i32_0 = arith.constant 0 : i32
    return %arg0, %arg1, %c0_i32 : i32, i32, i32
  }
}

module attributes {stable_mosaic.version = 11 : i64} {
  func.func @kernel(%arg0: i32, %arg1: memref<1x20x32xf32, #tpu.memory_space<vmem>>, %arg2: memref<3x9x20xbf16, #tpu.memory_space<vmem>>, %arg3: memref<3x32x256xbf16, #tpu.memory_space<vmem>>, %arg4: memref<1x256xf32, #tpu.memory_space<vmem>>, %arg5: memref<3x5x9xbf16, #tpu.memory_space<vmem>>, %arg6: memref<3x256x256xbf16, #tpu.memory_space<vmem>>, %arg7: memref<1x256xf32, #tpu.memory_space<vmem>>, %arg8: memref<256x32xf32, #tpu.memory_space<vmem>>, %arg9: memref<32x8xf32, #tpu.memory_space<vmem>>, %arg10: memref<1x8xf32, #tpu.memory_space<vmem>>, %arg11: memref<1x1x8xf32, #tpu.memory_space<vmem>>) attributes {dimension_semantics = [#tpu.dimension_semantics<parallel>], iteration_bounds = array<i64: 2>, scalar_prefetch = 0 : i64, scratch_operands = 0 : i64, tpu.core_type = #tpu.core_type<tc>, window_params = [{transform_indices = @transform_0, window_bounds = array<i64: 1, 20, 32>}, {pipeline_mode = #tpu.pipeline_mode<synchronous>, transform_indices = @transform_1, window_bounds = array<i64: 3, 9, 20>}, {pipeline_mode = #tpu.pipeline_mode<synchronous>, transform_indices = @transform_2, window_bounds = array<i64: 3, 32, 256>}, {pipeline_mode = #tpu.pipeline_mode<synchronous>, transform_indices = @transform_3, window_bounds = array<i64: 1, 256>}, {pipeline_mode = #tpu.pipeline_mode<synchronous>, transform_indices = @transform_4, window_bounds = array<i64: 3, 5, 9>}, {pipeline_mode = #tpu.pipeline_mode<synchronous>, transform_indices = @transform_5, window_bounds = array<i64: 3, 256, 256>}, {pipeline_mode = #tpu.pipeline_mode<synchronous>, transform_indices = @transform_6, window_bounds = array<i64: 1, 256>}, {pipeline_mode = #tpu.pipeline_mode<synchronous>, transform_indices = @transform_7, window_bounds = array<i64: 256, 32>}, {pipeline_mode = #tpu.pipeline_mode<synchronous>, transform_indices = @transform_8, window_bounds = array<i64: 32, 8>}, {pipeline_mode = #tpu.pipeline_mode<synchronous>, transform_indices = @transform_9, window_bounds = array<i64: 1, 8>}, {transform_indices = @transform_10, window_bounds = array<i64: 1, 1, 8>}]} {
    %c0 = arith.constant 0 : index
    %c0_0 = arith.constant 0 : index
    %c0_1 = arith.constant 0 : index
    %0 = vector.load %arg1[%c0, %c0_0, %c0_1] : memref<1x20x32xf32, #tpu.memory_space<vmem>>, vector<1x20x32xf32>
    %1 = vector.shape_cast %0 : vector<1x20x32xf32> to vector<20x32xf32>
    %2 = arith.truncf %1 : vector<20x32xf32> to vector<20x32xbf16>
    %c0_2 = arith.constant 0 : index
    %c0_3 = arith.constant 0 : index
    %c0_4 = arith.constant 0 : index
    %3 = vector.load %arg2[%c0_2, %c0_3, %c0_4] : memref<3x9x20xbf16, #tpu.memory_space<vmem>>, vector<1x9x20xbf16>
    %4 = vector.shape_cast %3 : vector<1x9x20xbf16> to vector<9x20xbf16>
    %cst = arith.constant dense<0.000000e+00> : vector<9x32xf32>
    %5 = tpu.matmul %4, %2, %cst {dimension_numbers = #tpu.dot_dimension_numbers<[1], [0], [0], [1], [0, 0, 1, 1], [], []>} : vector<9x20xbf16>, vector<20x32xbf16>, vector<9x32xf32> -> vector<9x32xf32>
    %6 = arith.truncf %5 : vector<9x32xf32> to vector<9x32xbf16>
    %c0_5 = arith.constant 0 : index
    %c0_6 = arith.constant 0 : index
    %c0_7 = arith.constant 0 : index
    %7 = vector.load %arg3[%c0_5, %c0_6, %c0_7] : memref<3x32x256xbf16, #tpu.memory_space<vmem>>, vector<1x32x256xbf16>
    %8 = vector.shape_cast %7 : vector<1x32x256xbf16> to vector<32x256xbf16>
    %cst_8 = arith.constant dense<0.000000e+00> : vector<9x256xf32>
    %9 = tpu.matmul %6, %8, %cst_8 {dimension_numbers = #tpu.dot_dimension_numbers<[1], [0], [0], [1], [0, 0, 1, 1], [], []>} : vector<9x32xbf16>, vector<32x256xbf16>, vector<9x256xf32> -> vector<9x256xf32>
    %c1 = arith.constant 1 : index
    %c0_9 = arith.constant 0 : index
    %c0_10 = arith.constant 0 : index
    %10 = vector.load %arg2[%c1, %c0_9, %c0_10] : memref<3x9x20xbf16, #tpu.memory_space<vmem>>, vector<1x9x20xbf16>
    %11 = vector.shape_cast %10 : vector<1x9x20xbf16> to vector<9x20xbf16>
    %cst_11 = arith.constant dense<0.000000e+00> : vector<9x32xf32>
    %12 = tpu.matmul %11, %2, %cst_11 {dimension_numbers = #tpu.dot_dimension_numbers<[1], [0], [0], [1], [0, 0, 1, 1], [], []>} : vector<9x20xbf16>, vector<20x32xbf16>, vector<9x32xf32> -> vector<9x32xf32>
    %13 = arith.truncf %12 : vector<9x32xf32> to vector<9x32xbf16>
    %c1_12 = arith.constant 1 : index
    %c0_13 = arith.constant 0 : index
    %c0_14 = arith.constant 0 : index
    %14 = vector.load %arg3[%c1_12, %c0_13, %c0_14] : memref<3x32x256xbf16, #tpu.memory_space<vmem>>, vector<1x32x256xbf16>
    %15 = vector.shape_cast %14 : vector<1x32x256xbf16> to vector<32x256xbf16>
    %cst_15 = arith.constant dense<0.000000e+00> : vector<9x256xf32>
    %16 = tpu.matmul %13, %15, %cst_15 {dimension_numbers = #tpu.dot_dimension_numbers<[1], [0], [0], [1], [0, 0, 1, 1], [], []>} : vector<9x32xbf16>, vector<32x256xbf16>, vector<9x256xf32> -> vector<9x256xf32>
    %17 = arith.addf %9, %16 : vector<9x256xf32>
    %c2 = arith.constant 2 : index
    %c0_16 = arith.constant 0 : index
    %c0_17 = arith.constant 0 : index
    %18 = vector.load %arg2[%c2, %c0_16, %c0_17] : memref<3x9x20xbf16, #tpu.memory_space<vmem>>, vector<1x9x20xbf16>
    %19 = vector.shape_cast %18 : vector<1x9x20xbf16> to vector<9x20xbf16>
    %cst_18 = arith.constant dense<0.000000e+00> : vector<9x32xf32>
    %20 = tpu.matmul %19, %2, %cst_18 {dimension_numbers = #tpu.dot_dimension_numbers<[1], [0], [0], [1], [0, 0, 1, 1], [], []>} : vector<9x20xbf16>, vector<20x32xbf16>, vector<9x32xf32> -> vector<9x32xf32>
    %21 = arith.truncf %20 : vector<9x32xf32> to vector<9x32xbf16>
    %c2_19 = arith.constant 2 : index
    %c0_20 = arith.constant 0 : index
    %c0_21 = arith.constant 0 : index
    %22 = vector.load %arg3[%c2_19, %c0_20, %c0_21] : memref<3x32x256xbf16, #tpu.memory_space<vmem>>, vector<1x32x256xbf16>
    %23 = vector.shape_cast %22 : vector<1x32x256xbf16> to vector<32x256xbf16>
    %cst_22 = arith.constant dense<0.000000e+00> : vector<9x256xf32>
    %24 = tpu.matmul %21, %23, %cst_22 {dimension_numbers = #tpu.dot_dimension_numbers<[1], [0], [0], [1], [0, 0, 1, 1], [], []>} : vector<9x32xbf16>, vector<32x256xbf16>, vector<9x256xf32> -> vector<9x256xf32>
    %25 = arith.addf %17, %24 : vector<9x256xf32>
    %c0_23 = arith.constant 0 : index
    %c0_24 = arith.constant 0 : index
    %26 = vector.load %arg4[%c0_23, %c0_24] : memref<1x256xf32, #tpu.memory_space<vmem>>, vector<1x256xf32>
    %27 = vector.broadcast %26 : vector<1x256xf32> to vector<9x256xf32>
    %28 = arith.addf %25, %27 : vector<9x256xf32>
    %cst_25 = arith.constant 0.000000e+00 : f32
    %29 = vector.broadcast %cst_25 : f32 to vector<9x256xf32>
    %30 = arith.maximumf %28, %29 : vector<9x256xf32>
    %31 = arith.truncf %30 : vector<9x256xf32> to vector<9x256xbf16>
    %c0_26 = arith.constant 0 : index
    %c0_27 = arith.constant 0 : index
    %c0_28 = arith.constant 0 : index
    %32 = vector.load %arg5[%c0_26, %c0_27, %c0_28] : memref<3x5x9xbf16, #tpu.memory_space<vmem>>, vector<1x5x9xbf16>
    %33 = vector.shape_cast %32 : vector<1x5x9xbf16> to vector<5x9xbf16>
    %cst_29 = arith.constant dense<0.000000e+00> : vector<5x256xf32>
    %34 = tpu.matmul %33, %31, %cst_29 {dimension_numbers = #tpu.dot_dimension_numbers<[1], [0], [0], [1], [0, 0, 1, 1], [], []>} : vector<5x9xbf16>, vector<9x256xbf16>, vector<5x256xf32> -> vector<5x256xf32>
    %35 = arith.truncf %34 : vector<5x256xf32> to vector<5x256xbf16>
    %c0_30 = arith.constant 0 : index
    %c0_31 = arith.constant 0 : index
    %c0_32 = arith.constant 0 : index
    %36 = vector.load %arg6[%c0_30, %c0_31, %c0_32] : memref<3x256x256xbf16, #tpu.memory_space<vmem>>, vector<1x256x256xbf16>
    %37 = vector.shape_cast %36 : vector<1x256x256xbf16> to vector<256x256xbf16>
    %cst_33 = arith.constant dense<0.000000e+00> : vector<5x256xf32>
    %38 = tpu.matmul %35, %37, %cst_33 {dimension_numbers = #tpu.dot_dimension_numbers<[1], [0], [0], [1], [0, 0, 1, 1], [], []>} : vector<5x256xbf16>, vector<256x256xbf16>, vector<5x256xf32> -> vector<5x256xf32>
    %c1_34 = arith.constant 1 : index
    %c0_35 = arith.constant 0 : index
    %c0_36 = arith.constant 0 : index
    %39 = vector.load %arg5[%c1_34, %c0_35, %c0_36] : memref<3x5x9xbf16, #tpu.memory_space<vmem>>, vector<1x5x9xbf16>
    %40 = vector.shape_cast %39 : vector<1x5x9xbf16> to vector<5x9xbf16>
    %cst_37 = arith.constant dense<0.000000e+00> : vector<5x256xf32>
    %41 = tpu.matmul %40, %31, %cst_37 {dimension_numbers = #tpu.dot_dimension_numbers<[1], [0], [0], [1], [0, 0, 1, 1], [], []>} : vector<5x9xbf16>, vector<9x256xbf16>, vector<5x256xf32> -> vector<5x256xf32>
    %42 = arith.truncf %41 : vector<5x256xf32> to vector<5x256xbf16>
    %c1_38 = arith.constant 1 : index
    %c0_39 = arith.constant 0 : index
    %c0_40 = arith.constant 0 : index
    %43 = vector.load %arg6[%c1_38, %c0_39, %c0_40] : memref<3x256x256xbf16, #tpu.memory_space<vmem>>, vector<1x256x256xbf16>
    %44 = vector.shape_cast %43 : vector<1x256x256xbf16> to vector<256x256xbf16>
    %cst_41 = arith.constant dense<0.000000e+00> : vector<5x256xf32>
    %45 = tpu.matmul %42, %44, %cst_41 {dimension_numbers = #tpu.dot_dimension_numbers<[1], [0], [0], [1], [0, 0, 1, 1], [], []>} : vector<5x256xbf16>, vector<256x256xbf16>, vector<5x256xf32> -> vector<5x256xf32>
    %46 = arith.addf %38, %45 : vector<5x256xf32>
    %c2_42 = arith.constant 2 : index
    %c0_43 = arith.constant 0 : index
    %c0_44 = arith.constant 0 : index
    %47 = vector.load %arg5[%c2_42, %c0_43, %c0_44] : memref<3x5x9xbf16, #tpu.memory_space<vmem>>, vector<1x5x9xbf16>
    %48 = vector.shape_cast %47 : vector<1x5x9xbf16> to vector<5x9xbf16>
    %cst_45 = arith.constant dense<0.000000e+00> : vector<5x256xf32>
    %49 = tpu.matmul %48, %31, %cst_45 {dimension_numbers = #tpu.dot_dimension_numbers<[1], [0], [0], [1], [0, 0, 1, 1], [], []>} : vector<5x9xbf16>, vector<9x256xbf16>, vector<5x256xf32> -> vector<5x256xf32>
    %50 = arith.truncf %49 : vector<5x256xf32> to vector<5x256xbf16>
    %c2_46 = arith.constant 2 : index
    %c0_47 = arith.constant 0 : index
    %c0_48 = arith.constant 0 : index
    %51 = vector.load %arg6[%c2_46, %c0_47, %c0_48] : memref<3x256x256xbf16, #tpu.memory_space<vmem>>, vector<1x256x256xbf16>
    %52 = vector.shape_cast %51 : vector<1x256x256xbf16> to vector<256x256xbf16>
    %cst_49 = arith.constant dense<0.000000e+00> : vector<5x256xf32>
    %53 = tpu.matmul %50, %52, %cst_49 {dimension_numbers = #tpu.dot_dimension_numbers<[1], [0], [0], [1], [0, 0, 1, 1], [], []>} : vector<5x256xbf16>, vector<256x256xbf16>, vector<5x256xf32> -> vector<5x256xf32>
    %54 = arith.addf %46, %53 : vector<5x256xf32>
    %c0_50 = arith.constant 0 : index
    %c0_51 = arith.constant 0 : index
    %55 = vector.load %arg7[%c0_50, %c0_51] : memref<1x256xf32, #tpu.memory_space<vmem>>, vector<1x256xf32>
    %56 = vector.broadcast %55 : vector<1x256xf32> to vector<5x256xf32>
    %57 = arith.addf %54, %56 : vector<5x256xf32>
    %cst_52 = arith.constant 0.000000e+00 : f32
    %58 = vector.broadcast %cst_52 : f32 to vector<5x256xf32>
    %59 = arith.maximumf %57, %58 : vector<5x256xf32>
    %cst_53 = arith.constant 9.99999997E-7 : f32
    %60 = vector.broadcast %cst_53 : f32 to vector<5x256xf32>
    %61 = arith.maximumf %59, %60 : vector<5x256xf32>
    %62 = arith.mulf %61, %61 : vector<5x256xf32>
    %63 = arith.mulf %62, %61 : vector<5x256xf32>
    %cst_54 = arith.constant dense<0.000000e+00> : vector<256xf32>
    %64 = vector.multi_reduction <add>, %63, %cst_54 [0] : vector<5x256xf32> to vector<256xf32>
    %65 = vector.shape_cast %64 : vector<256xf32> to vector<1x256xf32>
    %c0_55 = arith.constant 0 : index
    %c0_56 = arith.constant 0 : index
    %66 = vector.load %arg8[%c0_55, %c0_56] : memref<256x32xf32, #tpu.memory_space<vmem>>, vector<256x32xf32>
    %cst_57 = arith.constant dense<0.000000e+00> : vector<1x32xf32>
    %67 = tpu.matmul %65, %66, %cst_57 {dimension_numbers = #tpu.dot_dimension_numbers<[1], [0], [0], [1], [0, 0, 1, 1], [], []>} : vector<1x256xf32>, vector<256x32xf32>, vector<1x32xf32> -> vector<1x32xf32>
    %cst_58 = arith.constant 2.500000e-02 : f32
    %68 = vector.broadcast %cst_58 : f32 to vector<1x32xf32>
    %69 = arith.mulf %67, %68 : vector<1x32xf32>
    %70 = math.log %69 : vector<1x32xf32>
    %cst_59 = arith.constant 0.333333343 : f32
    %71 = vector.broadcast %cst_59 : f32 to vector<1x32xf32>
    %72 = arith.mulf %70, %71 : vector<1x32xf32>
    %73 = math.exp %72 : vector<1x32xf32>
    %cst_60 = arith.constant 0.000000e+00 : f32
    %74 = vector.broadcast %cst_60 : f32 to vector<1x32xf32>
    %75 = arith.maximumf %73, %74 : vector<1x32xf32>
    %c0_61 = arith.constant 0 : index
    %c0_62 = arith.constant 0 : index
    %76 = vector.load %arg9[%c0_61, %c0_62] : memref<32x8xf32, #tpu.memory_space<vmem>>, vector<32x8xf32>
    %cst_63 = arith.constant dense<0.000000e+00> : vector<1x8xf32>
    %77 = tpu.matmul %75, %76, %cst_63 {dimension_numbers = #tpu.dot_dimension_numbers<[1], [0], [0], [1], [0, 0, 1, 1], [], []>} : vector<1x32xf32>, vector<32x8xf32>, vector<1x8xf32> -> vector<1x8xf32>
    %c0_64 = arith.constant 0 : index
    %c0_65 = arith.constant 0 : index
    %78 = vector.load %arg10[%c0_64, %c0_65] : memref<1x8xf32, #tpu.memory_space<vmem>>, vector<1x8xf32>
    %79 = arith.addf %77, %78 : vector<1x8xf32>
    %c0_66 = arith.constant 0 : index
    %c0_67 = arith.constant 0 : index
    %c0_68 = arith.constant 0 : index
    %80 = vector.load %arg11[%c0_66, %c0_67, %c0_68] : memref<1x1x8xf32, #tpu.memory_space<vmem>>, vector<1x1x8xf32>
    %81 = vector.shape_cast %80 : vector<1x1x8xf32> to vector<1x8xf32>
    %82 = vector.shape_cast %79 : vector<1x8xf32> to vector<1x1x8xf32>
    tpu.vector_store %arg11[%c0_66, %c0_67, %c0_68], %82 {strides = array<i32>} : memref<1x1x8xf32, #tpu.memory_space<vmem>>, vector<1x1x8xf32>,
    return
  }
  func.func @transform_0(%arg0: i32) -> (i32, i32, i32) {
    %c0_i32 = arith.constant 0 : i32
    %c0_i32_0 = arith.constant 0 : i32
    %c0_i32_1 = arith.constant 0 : i32
    return %arg0, %c0_i32, %c0_i32_0 : i32, i32, i32
  }
  func.func @transform_1(%arg0: i32) -> (i32, i32, i32) {
    %c0_i32 = arith.constant 0 : i32
    %c0_i32_0 = arith.constant 0 : i32
    %c0_i32_1 = arith.constant 0 : i32
    %c0_i32_2 = arith.constant 0 : i32
    return %c0_i32, %c0_i32_0, %c0_i32_1 : i32, i32, i32
  }
  func.func @transform_2(%arg0: i32) -> (i32, i32, i32) {
    %c0_i32 = arith.constant 0 : i32
    %c0_i32_0 = arith.constant 0 : i32
    %c0_i32_1 = arith.constant 0 : i32
    %c0_i32_2 = arith.constant 0 : i32
    return %c0_i32, %c0_i32_0, %c0_i32_1 : i32, i32, i32
  }
  func.func @transform_3(%arg0: i32) -> (i32, i32) {
    %c0_i32 = arith.constant 0 : i32
    %c0_i32_0 = arith.constant 0 : i32
    %c0_i32_1 = arith.constant 0 : i32
    return %c0_i32, %c0_i32_0 : i32, i32
  }
  func.func @transform_4(%arg0: i32) -> (i32, i32, i32) {
    %c0_i32 = arith.constant 0 : i32
    %c0_i32_0 = arith.constant 0 : i32
    %c0_i32_1 = arith.constant 0 : i32
    %c0_i32_2 = arith.constant 0 : i32
    return %c0_i32, %c0_i32_0, %c0_i32_1 : i32, i32, i32
  }
  func.func @transform_5(%arg0: i32) -> (i32, i32, i32) {
    %c0_i32 = arith.constant 0 : i32
    %c0_i32_0 = arith.constant 0 : i32
    %c0_i32_1 = arith.constant 0 : i32
    %c0_i32_2 = arith.constant 0 : i32
    return %c0_i32, %c0_i32_0, %c0_i32_1 : i32, i32, i32
  }
  func.func @transform_6(%arg0: i32) -> (i32, i32) {
    %c0_i32 = arith.constant 0 : i32
    %c0_i32_0 = arith.constant 0 : i32
    %c0_i32_1 = arith.constant 0 : i32
    return %c0_i32, %c0_i32_0 : i32, i32
  }
  func.func @transform_7(%arg0: i32) -> (i32, i32) {
    %c0_i32 = arith.constant 0 : i32
    %c0_i32_0 = arith.constant 0 : i32
    %c0_i32_1 = arith.constant 0 : i32
    return %c0_i32, %c0_i32_0 : i32, i32
  }
  func.func @transform_8(%arg0: i32) -> (i32, i32) {
    %c0_i32 = arith.constant 0 : i32
    %c0_i32_0 = arith.constant 0 : i32
    %c0_i32_1 = arith.constant 0 : i32
    return %c0_i32, %c0_i32_0 : i32, i32
  }
  func.func @transform_9(%arg0: i32) -> (i32, i32) {
    %c0_i32 = arith.constant 0 : i32
    %c0_i32_0 = arith.constant 0 : i32
    %c0_i32_1 = arith.constant 0 : i32
    return %c0_i32, %c0_i32_0 : i32, i32
  }
  func.func @transform_10(%arg0: i32) -> (i32, i32, i32) {
    %c0_i32 = arith.constant 0 : i32
    %c0_i32_0 = arith.constant 0 : i32
    %c0_i32_1 = arith.constant 0 : i32
    return %arg0, %c0_i32, %c0_i32_0 : i32, i32, i32
  }
}

</mosaic_0001>

<bundles_post_ra>
// kernel: _lambda_.2
= control target key start
LH: loop header
LB: loop body
LE: loop exit
PB: predicated region body
PF: predicated region fallthrough
CT: control target
= control target key end

     0   :  { %10 = vsyncpa [#allocation3], 0  ;;  %s1872_s0 = inlined_call_operand.vmem [shape: bf16[2,5,256], index: 0, kind: input, shape index: {}]   ;;  %s1873_s1 = inlined_call_operand.hbm [shape: bf16[256,512], index: 1, kind: input, shape index: {}]   ;;  %s1874_s2 = inlined_call_operand.vmem [shape: bf16[512,128], index: 2, kind: input, shape index: {}]   ;;  %s1875_s3 = inlined_call_operand.vmem [shape: f32[1,128], index: 3, kind: input, shape index: {}]   ;;  %s1876_s4 = inlined_call_operand.hbm [shape: f32[1,128], index: 4, kind: input, shape index: {}]   ;;  %s1877_s5 = inlined_call_operand.vmem [shape: f32[2,5,128], index: 5, kind: output, shape index: {}]  }
   0x1   :  { %11 = vsyncpa [#allocation5], 0  ;;  %s1684_s18 = smov 0   ;;  %s1686_s19 = smov 0  }
   0x2   :  { %s1688_s20 = smov 0  }
   0x3 LB: > { %s1228_s21 = sadd.s32 4294967295, %s1648_s20   ;;  %s29_s22 = sadd.s32 1, %s1644_s19  ;;  %s1648_s20 = sphi %s1688_s20, %s17_s20   ;;  %s1644_s19 = sphi %s1686_s19, %s1882_s19   ;;  %s1640_s18 = sphi %s1684_s18, %s1881_s18  }
   0x4   : > { %p31_p0 = scmp.ge.s32.totalorder %s29_s22, 2  ;;  %p1230_p1 = scmp.ge.s32.totalorder %s1648_s20, 1 }
   0x5   : > { %p174_p2 = scmp.lt.s32.totalorder %s1648_s20, 3  ;;  %p1709_p4 = scmp.eq.s32.totalorder %s1228_s21, 0 }
   0x6   : > { %s1884_s22 = smov (%p31_p0, %s29_s22), 0  ;;  %s1650_s25 = smov [#allocation2]  }
   0x7   : > { %p1705_p3 = pnand %p1230_p1, %p174_p2  ;;  %s186_s26 = sshll.u32 %s1650_s25, 4  ;;  %s187_s26 = int_to_ptr.vmem [resolvable:$true] %s186_s26 }
   0x8   : > { %s1651_s28 = smov [#allocation4]   ;;  %s1577_s30 = scalar_lea.vmem %s187_s26, 8192 }
   0x9   : > { %p1395_p5 = pneg %p1705_p3  ;;  %s206_s29 = sshll.u32 %s1651_s28, 4  ;;  %s207_s29 = int_to_ptr.vmem [resolvable:$true] %s206_s29 }
   0xa   : > { %p1578_p8 = scmp.ne.s32.totalorder %s187_s26, %s1577_s30  ;;  %p1585_p11 = scmp.lt.s32.totalorder %s187_s26, %s187_s26 }
   0xb   : > { %p1717_p6 = pnand %p1709_p4, %p1395_p5  ;;  %p1586_p12 = scmp.lt.s32.totalorder %s1577_s30, %s1577_s30 }
   0xd   : > { %p1568_p7 = pneg %p1717_p6  ;;  %p1587_p13 = por %p1586_p12, %p1585_p11 }
   0xf   : > { %p1580_p9 = pnand %p1578_p8, %p1568_p7 }
  0x11   : > { %p1581_p10 = pneg %p1580_p9 }
  0x13   : > { %p1588_p0 = pnand %p1587_p13, %p1581_p10 }
  0x15   : > { %1591 = shalt.err (!%p1588_p0)
}
  0x16   : > { %s1652_s6 = smov 256   ;;  %s1653_s7 = smov 16  }
  0x17   : > { %1398 = dma.hbm_to_vmem [thread:$0]  (!%p1717_p6), %s1873_s1, 8192, %s187_s26, [#allocation3], %s1652_s6, %s1652_s6, %s1653_s7  }
  0x18   : > { %s1603_s10 = scalar_lea.vmem %s207_s29, 16  ;;  %s1610_s11 = scalar_lea.vmem %s207_s29, 32 }
  0x19   : > { %p1604_p1 = scmp.ne.s32.totalorder %s207_s29, %s1603_s10  ;;  %p1611_p8 = scmp.lt.s32.totalorder %s207_s29, %s207_s29 }
  0x1a   : > { %p1612_p9 = scmp.lt.s32.totalorder %s1610_s11, %s1603_s10 }
  0x1b   : > { %p1606_p2 = pnand %p1604_p1, %p1568_p7 }
  0x1c   : > { %p1613_p10 = por %p1612_p9, %p1611_p8 }
  0x1d   : > { %p1607_p5 = pneg %p1606_p2 }
  0x1f   : > { %p1614_p11 = pnand %p1613_p10, %p1607_p5 }
  0x21   : > { %1617 = shalt.err (!%p1614_p11)
}
  0x22   : > { %1401 = dma.hbm_to_vmem [thread:$0]  (!%p1717_p6), %s1876_s4, 16, %s207_s29, [#allocation5]  }
  0x23   : > { %231 = sbr.rel (%p1705_p3) target bundleno = 532 (0x214), region = 40 }
  0x28   : > { %1631 = dma.done.wait (%p1709_p4), [#allocation3], 8192  }
  0x29   : > { %1633 = vsyncadd (%p1709_p4), [#allocation3], 4294959104 }
  0x2a   : > { %1635 = dma.done.wait (%p1709_p4), [#allocation5], 16  }
  0x2b   : > { %1637 = vsyncadd (%p1709_p4), [#allocation5], 4294967280  ;;  %v1434_v0 = vld [vmem:[#allocation2 + $0xe4] ss:$16 sps:$4 sm:$0xff]   ;;  %v1436_v1 = vld [vmem:[#allocation2 + $0xec] ss:$16 sps:$4 sm:$0xff]  }
  0x2c   : > { %678 = vmatprep.subr.bf16.mxu0 %v1434_v0  ;;  %v1438_v2 = vld [vmem:[#allocation2 + $0xe0] ss:$16 sps:$4 sm:$0xff]   ;;  %v1439_v3 = vld [vmem:[#allocation2 + $0xe8] ss:$16 sps:$4 sm:$0xff]   ;;  %719 = vmatprep.subr.bf16.mxu1 %v1436_v1  ;;  %v1440_v4 = vld [vmem:[#allocation2 + $0xc4] ss:$16 sps:$4 sm:$0xff]  }
  0x2d   : > { %679 = vmatpush1.bf16.msra.mxu0 %v1438_v2  ;;  %720 = vmatpush1.bf16.msra.mxu1 %v1439_v3  ;;  %v1442_v5 = vld [vmem:[#allocation2 + $0xcc] ss:$16 sps:$4 sm:$0xff]   ;;  %v1444_v6 = vld [vmem:[#allocation2 + $0xc0] ss:$16 sps:$4 sm:$0xff]   ;;  %v1445_v7 = vld [vmem:[#allocation2 + $0xc8] ss:$16 sps:$4 sm:$0xff]  }
  0x2e   : > { %680 = vmatprep.subr.bf16.mxu0 %v1440_v4  ;;  %721 = vmatprep.subr.bf16.mxu1 %v1442_v5  ;;  %v1446_v8 = vld [vmem:[#allocation2 + $0xa4] ss:$16 sps:$4 sm:$0xff]   ;;  %v1448_v9 = vld [vmem:[#allocation2 + $0xac] ss:$16 sps:$4 sm:$0xff]   ;;  %v1450_v10 = vld [vmem:[#allocation2 + $0xa0] ss:$16 sps:$4 sm:$0xff]  }
  0x2f   : > { %v1451_v11 = vld [vmem:[#allocation2 + $0xa8] ss:$16 sps:$4 sm:$0xff]   ;;  %v1452_v12 = vld [vmem:[#allocation2 + $0x84] ss:$16 sps:$4 sm:$0xff]   ;;  %v1454_v13 = vld [vmem:[#allocation2 + $0x8c] ss:$16 sps:$4 sm:$0xff]  }
  0x30   : > { %v1456_v14 = vld [vmem:[#allocation2 + $0x80] ss:$16 sps:$4 sm:$0xff]   ;;  %v1457_v15 = vld [vmem:[#allocation2 + $0x88] ss:$16 sps:$4 sm:$0xff]   ;;  %v1458_v16 = vld [vmem:[#allocation2 + $0x64] ss:$16 sps:$4 sm:$0xff]  }
  0x31   : > { %681 = vmatpush1.bf16.msra.mxu0 %v1444_v6  ;;  %722 = vmatpush1.bf16.msra.mxu1 %v1445_v7  ;;  %v1460_v17 = vld [vmem:[#allocation2 + $0x6c] ss:$16 sps:$4 sm:$0xff]   ;;  %v1462_v18 = vld [vmem:[#allocation2 + $0x60] ss:$16 sps:$4 sm:$0xff]   ;;  %v1463_v19 = vld [vmem:[#allocation2 + $0x68] ss:$16 sps:$4 sm:$0xff]  }
  0x32   : > { %682 = vmatprep.subr.bf16.mxu0 %v1446_v8  ;;  %723 = vmatprep.subr.bf16.mxu1 %v1448_v9  ;;  %v1464_v20 = vld [vmem:[#allocation2 + $0x44] ss:$16 sps:$4 sm:$0xff]   ;;  %v1466_v21 = vld [vmem:[#allocation2 + $0x4c] ss:$16 sps:$4 sm:$0xff]   ;;  %v1468_v22 = vld [vmem:[#allocation2 + $0x40] ss:$16 sps:$4 sm:$0xff]  }
  0x33   : > { %v1469_v23 = vld [vmem:[#allocation2 + $0x48] ss:$16 sps:$4 sm:$0xff]   ;;  %v1470_v24 = vld [vmem:[#allocation2 + $0x24] ss:$16 sps:$4 sm:$0xff]   ;;  %v1472_v25 = vld [vmem:[#allocation2 + $0x2c] ss:$16 sps:$4 sm:$0xff]  }
  0x34   : > { %v1474_v26 = vld [vmem:[#allocation2 + $0x20] ss:$16 sps:$4 sm:$0xff]   ;;  %v1475_v27 = vld [vmem:[#allocation2 + $0x28] ss:$16 sps:$4 sm:$0xff]   ;;  %v1476_v28 = vld [vmem:[#allocation2 + $0x4] ss:$16 sps:$4 sm:$0xff]  }
  0x35   : > { %683 = vmatpush1.bf16.msra.mxu0 %v1450_v10  ;;  %724 = vmatpush1.bf16.msra.mxu1 %v1451_v11  ;;  %v1478_v29 = vld [vmem:[#allocation2 + $0xc] ss:$16 sps:$4 sm:$0xff]   ;;  %v1480_v30 = vld [vmem:[#allocation2] ss:$16 sps:$4 sm:$0xff]   ;;  %v1481_v31 = vld [vmem:[#allocation2 + $0x8] ss:$16 sps:$4 sm:$0xff]  }
  0x36   : > { %684 = vmatprep.subr.bf16.mxu0 %v1452_v12  ;;  %725 = vmatprep.subr.bf16.mxu1 %v1454_v13  ;;  %v1482_v32 = vld [vmem:[#allocation2 + $0x1e4] ss:$16 sps:$4 sm:$0xff]   ;;  %p269_p3 = scmp.lt.s32.totalorder %s1640_s18, 1  ;;  %v1484_v33 = vld [vmem:[#allocation2 + $0x1ec] ss:$16 sps:$4 sm:$0xff]  }
  0x37   : > { %v1486_v34 = vld [vmem:[#allocation2 + $0x1e0] ss:$16 sps:$4 sm:$0xff]   ;;  %v1487_v35 = vld [vmem:[#allocation2 + $0x1e8] ss:$16 sps:$4 sm:$0xff]   ;;  %v1488_v36 = vld [vmem:[#allocation2 + $0x1c4] ss:$16 sps:$4 sm:$0xff]  }
  0x38   : > { %s1886_s18 = smov (!%p269_p3, %s1640_s18), 1  ;;  %v1490_v37 = vld [vmem:[#allocation2 + $0x1cc] ss:$16 sps:$4 sm:$0xff]   ;;  %v1492_v38 = vld [vmem:[#allocation2 + $0x1c0] ss:$16 sps:$4 sm:$0xff]  }
  0x39   : > { %685 = vmatpush1.bf16.msra.mxu0 %v1456_v14  ;;  %726 = vmatpush1.bf16.msra.mxu1 %v1457_v15  ;;  %v1493_v39 = vld [vmem:[#allocation2 + $0x1c8] ss:$16 sps:$4 sm:$0xff]   ;;  %v1494_v40 = vld [vmem:[#allocation2 + $0x1a4] ss:$16 sps:$4 sm:$0xff]   ;;  %s1342_s14 = sshll.u32 %s1886_s18, 3 }
  0x3a   : > { %686 = vmatprep.subr.bf16.mxu0 %v1458_v16  ;;  %727 = vmatprep.subr.bf16.mxu1 %v1460_v17  ;;  %v1496_v41 = vld [vmem:[#allocation2 + $0x1ac] ss:$16 sps:$4 sm:$0xff]   ;;  %v1498_v42 = vld [vmem:[#allocation2 + $0x1a0] ss:$16 sps:$4 sm:$0xff]   ;;  %v1499_v43 = vld [vmem:[#allocation2 + $0x1a8] ss:$16 sps:$4 sm:$0xff]   ;;  %s277_s17 = scalar_lea.vmem %s1872_s0, %s1342_s14  ;;  %s284_s30 = scalar_lea.vmem %s1877_s5, %s1342_s14 }
  0x3b   : > { %v1500_v44 = vld [vmem:[#allocation2 + $0x184] ss:$16 sps:$4 sm:$0xff]   ;;  %v1502_v45 = vld [vmem:[#allocation2 + $0x18c] ss:$16 sps:$4 sm:$0xff]   ;;  %v1504_v46 = vld [vmem:[#allocation2 + $0x180] ss:$16 sps:$4 sm:$0xff]  }
  0x3c   : > { %v286_v47 = vld [vmem:[%s277_s17] sm:$0x77]  ;;  %v1505_v48 = vld [vmem:[#allocation2 + $0x188] ss:$16 sps:$4 sm:$0xff]   ;;  %v1508_v51 = vld [vmem:[#allocation2 + $0x16c] ss:$16 sps:$4 sm:$0xff]  }
  0x3d   : > { %687 = vmatpush1.bf16.msra.mxu0 %v1462_v18  ;;  %728 = vmatpush1.bf16.msra.mxu1 %v1463_v19  ;;  %v1241_v49 = vcombine.high %v286_v47, %v286_v47  ;;  %v1506_v50 = vld [vmem:[#allocation2 + $0x164] ss:$16 sps:$4 sm:$0xff]   ;;  %v1510_v52 = vld [vmem:[#allocation2 + $0x160] ss:$16 sps:$4 sm:$0xff]   ;;  %v1511_v53 = vld [vmem:[#allocation2 + $0x168] ss:$16 sps:$4 sm:$0xff]   ;;  %v1240_v5 = vcombine.low %v286_v47, %v286_v47 }
  0x3e   : > { %688 = vmatprep.subr.bf16.mxu0 %v1464_v20  ;;  %729 = vmatprep.subr.bf16.mxu1 %v1466_v21  ;;  %v1512_v54 = vld [vmem:[#allocation2 + $0x144] ss:$16 sps:$4 sm:$0xff]   ;;  %v1514_v55 = vld [vmem:[#allocation2 + $0x14c] ss:$16 sps:$4 sm:$0xff]   ;;  %v1516_v56 = vld [vmem:[#allocation2 + $0x140] ss:$16 sps:$4 sm:$0xff]  }
  0x3f   : > { %710 = vmatprep.mubr.bf16.mxu0 %v1241_v49  ;;  %751 = vmatprep.mubr.bf16.mxu1 %v1241_v49  ;;  %v1517_v57 = vld [vmem:[#allocation2 + $0x148] ss:$16 sps:$4 sm:$0xff]   ;;  %v1518_v58 = vld [vmem:[#allocation2 + $0x124] ss:$16 sps:$4 sm:$0xff]   ;;  %v1520_v59 = vld [vmem:[#allocation2 + $0x12c] ss:$16 sps:$4 sm:$0xff]  }
  0x40   : > { %v1522_v60 = vld [vmem:[#allocation2 + $0x120] ss:$16 sps:$4 sm:$0xff]   ;;  %v1523_v61 = vld [vmem:[#allocation2 + $0x128] ss:$16 sps:$4 sm:$0xff]   ;;  %v1524_v62 = vld [vmem:[#allocation2 + $0x104] ss:$16 sps:$4 sm:$0xff]  }
  0x41   : > { %689 = vmatpush1.bf16.msra.mxu0 %v1468_v22  ;;  %730 = vmatpush1.bf16.msra.mxu1 %v1469_v23  ;;  %v1526_v63 = vld [vmem:[#allocation2 + $0x10c] ss:$16 sps:$4 sm:$0xff]   ;;  %v1528_v0 = vld [vmem:[#allocation2 + $0x100] ss:$16 sps:$4 sm:$0xff]   ;;  %v1529_v1 = vld [vmem:[#allocation2 + $0x108] ss:$16 sps:$4 sm:$0xff]  }
  0x42   : > { %690 = vmatprep.subr.bf16.mxu0 %v1470_v24  ;;  %731 = vmatprep.subr.bf16.mxu1 %v1472_v25  ;;  %v1532_v2 = vld [vmem:[%s1874_s2 + $0x78] sm:$0xff]   ;;  %v1536_v7 = vld [vmem:[%s1874_s2 + $0x70] sm:$0xff]   ;;  %v1540_v11 = vld [vmem:[%s1874_s2 + $0x68] sm:$0xff]  }
  0x43   : > { %v1533_v3 = vld [vmem:[%s1874_s2 + $0xf8] sm:$0xff]   ;;  %v1537_v8 = vld [vmem:[%s1874_s2 + $0xf0] sm:$0xff]   ;;  %v1541_v12 = vld [vmem:[%s1874_s2 + $0xe8] sm:$0xff]  }
  0x44   : > { %v1534_v4 = vld [vmem:[%s1874_s2 + $0x38] sm:$0xff]   ;;  %v1538_v9 = vld [vmem:[%s1874_s2 + $0x30] sm:$0xff]   ;;  %v1542_v13 = vld [vmem:[%s1874_s2 + $0x28] sm:$0xff]  }
  0x45   : > { %691 = vmatpush1.bf16.msra.mxu0 %v1474_v26  ;;  %732 = vmatpush1.bf16.msra.mxu1 %v1475_v27  ;;  %v1535_v6 = vld [vmem:[%s1874_s2 + $0xb8] sm:$0xff]   ;;  %v1539_v10 = vld [vmem:[%s1874_s2 + $0xb0] sm:$0xff]   ;;  %v1543_v14 = vld [vmem:[%s1874_s2 + $0xa8] sm:$0xff]  }
  0x46   : > { %692 = vmatprep.subr.bf16.mxu0 %v1476_v28  ;;  %733 = vmatprep.subr.bf16.mxu1 %v1478_v29  ;;  %v1544_v15 = vld [vmem:[%s1874_s2 + $0x60] sm:$0xff]   ;;  %v1548_v19 = vld [vmem:[%s1874_s2 + $0x58] sm:$0xff]   ;;  %v1552_v23 = vld [vmem:[%s1874_s2 + $0x50] sm:$0xff]  }
  0x47   : > { %v1545_v16 = vld [vmem:[%s1874_s2 + $0xe0] sm:$0xff]   ;;  %v1549_v20 = vld [vmem:[%s1874_s2 + $0xd8] sm:$0xff]   ;;  %v1553_v24 = vld [vmem:[%s1874_s2 + $0xd0] sm:$0xff]  }
  0x48   : > { %v1546_v17 = vld [vmem:[%s1874_s2 + $0x20] sm:$0xff]   ;;  %v1550_v21 = vld [vmem:[%s1874_s2 + $0x18] sm:$0xff]   ;;  %v1554_v25 = vld [vmem:[%s1874_s2 + $0x10] sm:$0xff]  }
  0x49   : > { %693 = vmatpush1.bf16.msra.mxu0 %v1480_v30  ;;  %734 = vmatpush1.bf16.msra.mxu1 %v1481_v31  ;;  %v1547_v18 = vld [vmem:[%s1874_s2 + $0xa0] sm:$0xff]   ;;  %v1551_v22 = vld [vmem:[%s1874_s2 + $0x98] sm:$0xff]   ;;  %v1555_v26 = vld [vmem:[%s1874_s2 + $0x90] sm:$0xff]  }
  0x4a   : > { %694 = vmatprep.subr.bf16.mxu0 %v1482_v32  ;;  %735 = vmatprep.subr.bf16.mxu1 %v1484_v33  ;;  %v1556_v27 = vld [vmem:[%s1874_s2 + $0x48] sm:$0xff]   ;;  %v1560_v31 = vld [vmem:[%s1874_s2 + $0x40] sm:$0xff]  }
  0x4b   : > { %v1557_v28 = vld [vmem:[%s1874_s2 + $0xc8] sm:$0xff]   ;;  %v1561_v32 = vld [vmem:[%s1874_s2 + $0xc0] sm:$0xff]  }
  0x4c   : > { %v1558_v29 = vld [vmem:[%s1874_s2 + $0x8] sm:$0xff]   ;;  %v1562_v33 = vld [vmem:[%s1874_s2] sm:$0xff]  }
  0x4d   : > { %695 = vmatpush2.bf16.msra.mxu0 %v1486_v34  ;;  %736 = vmatpush2.bf16.msra.mxu1 %v1487_v35  ;;  %v1559_v30 = vld [vmem:[%s1874_s2 + $0x88] sm:$0xff]   ;;  %v1563_v34 = vld [vmem:[%s1874_s2 + $0x80] sm:$0xff]  }
  0x4e   : > { %696 = vmatprep.subr.bf16.mxu0 %v1488_v36  ;;  %737 = vmatprep.subr.bf16.mxu1 %v1490_v37 }
  0x51   : > { %697 = vmatpush2.bf16.msra.mxu0 %v1492_v38  ;;  %738 = vmatpush2.bf16.msra.mxu1 %v1493_v39 }
  0x52   : > { %698 = vmatprep.subr.bf16.mxu0 %v1494_v40  ;;  %739 = vmatprep.subr.bf16.mxu1 %v1496_v41 }
  0x55   : > { %699 = vmatpush2.bf16.msra.mxu0 %v1498_v42  ;;  %740 = vmatpush2.bf16.msra.mxu1 %v1499_v43 }
  0x56   : > { %700 = vmatprep.subr.bf16.mxu0 %v1500_v44  ;;  %741 = vmatprep.subr.bf16.mxu1 %v1502_v45 }
  0x59   : > { %701 = vmatpush2.bf16.msra.mxu0 %v1504_v46  ;;  %742 = vmatpush2.bf16.msra.mxu1 %v1505_v48 }
  0x5a   : > { %702 = vmatprep.subr.bf16.mxu0 %v1506_v50  ;;  %743 = vmatprep.subr.bf16.mxu1 %v1508_v51 }
  0x5d   : > { %703 = vmatpush2.bf16.msra.mxu0 %v1510_v52  ;;  %744 = vmatpush2.bf16.msra.mxu1 %v1511_v53 }
  0x5e   : > { %704 = vmatprep.subr.bf16.mxu0 %v1512_v54  ;;  %745 = vmatprep.subr.bf16.mxu1 %v1514_v55 }
  0x61   : > { %705 = vmatpush2.bf16.msra.mxu0 %v1516_v56  ;;  %746 = vmatpush2.bf16.msra.mxu1 %v1517_v57 }
  0x62   : > { %706 = vmatprep.subr.bf16.mxu0 %v1518_v58  ;;  %747 = vmatprep.subr.bf16.mxu1 %v1520_v59 }
  0x65   : > { %707 = vmatpush2.bf16.msra.mxu0 %v1522_v60  ;;  %748 = vmatpush2.bf16.msra.mxu1 %v1523_v61 }
  0x66   : > { %708 = vmatprep.subr.bf16.mxu0 %v1524_v62  ;;  %749 = vmatprep.subr.bf16.mxu1 %v1526_v63 }
  0x69   : > { %709 = vmatpush2.bf16.msra.mxu0 %v1528_v0  ;;  %750 = vmatpush2.bf16.msra.mxu1 %v1529_v1  ;;  %v1338_v1 = vld [vmem:[%s1875_s3] ss:$0 sm:$0xff] }
  0x6a   : > { %1343 = vmatprep.subr.bf16.mxu0 %v1532_v2  ;;  %1365 = vmatprep.subr.bf16.mxu1 %v1533_v3  ;;  %v1339_v3 = vld [vmem:[#allocation4] ss:$0 sm:$0xff] }
  0x6c   : > { %711 = vmatmul.mubr.bf16.vlgmr.msra.gmra.mxu0 %v1240_v5  ;;  %752 = vmatmul.mubr.bf16.vlgmr.msra.gmra.mxu1 %v1240_v5 }
  0x6d   : > { %1344 = vmatpush3.bf16.msra.mxu0 %v1534_v4  ;;  %1366 = vmatpush3.bf16.msra.mxu1 %v1535_v6 }
  0x6e   : > { %1345 = vmatprep.subr.bf16.mxu0 %v1536_v7  ;;  %1367 = vmatprep.subr.bf16.mxu1 %v1537_v8 }
  0x71   : > { %1346 = vmatpush3.bf16.msra.mxu0 %v1538_v9  ;;  %1368 = vmatpush3.bf16.msra.mxu1 %v1539_v10 }
  0x72   : > { %1347 = vmatprep.subr.bf16.mxu0 %v1540_v11  ;;  %1369 = vmatprep.subr.bf16.mxu1 %v1541_v12 }
  0x75   : > { %1348 = vmatpush3.bf16.msra.mxu0 %v1542_v13  ;;  %1370 = vmatpush3.bf16.msra.mxu1 %v1543_v14 }
  0x76   : > { %1349 = vmatprep.subr.bf16.mxu0 %v1544_v15  ;;  %1371 = vmatprep.subr.bf16.mxu1 %v1545_v16 }
  0x79   : > { %1350 = vmatpush3.bf16.msra.mxu0 %v1546_v17  ;;  %1372 = vmatpush3.bf16.msra.mxu1 %v1547_v18 }
  0x7a   : > { %1351 = vmatprep.subr.bf16.mxu0 %v1548_v19  ;;  %1373 = vmatprep.subr.bf16.mxu1 %v1549_v20 }
  0x7d   : > { %1352 = vmatpush3.bf16.msra.mxu0 %v1550_v21  ;;  %1374 = vmatpush3.bf16.msra.mxu1 %v1551_v22 }
  0x7e   : > { %1353 = vmatprep.subr.bf16.mxu0 %v1552_v23  ;;  %1375 = vmatprep.subr.bf16.mxu1 %v1553_v24 }
  0x81   : > { %1354 = vmatpush3.bf16.msra.mxu0 %v1554_v25  ;;  %1376 = vmatpush3.bf16.msra.mxu1 %v1555_v26 }
  0x82   : > { %1355 = vmatprep.subr.bf16.mxu0 %v1556_v27  ;;  %1377 = vmatprep.subr.bf16.mxu1 %v1557_v28 }
  0x85   : > { %1356 = vmatpush3.bf16.msra.mxu0 %v1558_v29  ;;  %1378 = vmatpush3.bf16.msra.mxu1 %v1559_v30 }
  0x86   : > { %1357 = vmatprep.subr.bf16.mxu0 %v1560_v31  ;;  %1379 = vmatprep.subr.bf16.mxu1 %v1561_v32 }
  0x89   : > { %1358 = vmatpush3.bf16.msra.mxu0 %v1562_v33  ;;  %1380 = vmatpush3.bf16.msra.mxu1 %v1563_v34 }
 0x12c   : > { %v712_v35 = vpop.f32.mrf.mxu0  ;;  %v753_v36 = vpop.f32.mrf.mxu1 }
 0x12d   : > { %v760_v37 = vmul.f32 %v712_v35, %v712_v35  ;;  %v762_v38 = vmul.f32 %v753_v36, %v753_v36 }
 0x12e   : > { %v714_v39 = vpop.f32.mrf.mxu0  ;;  %v755_v40 = vpop.f32.mrf.mxu1 }
 0x12f   : > { %v761_v41 = vmul.f32 %v714_v39, %v714_v39  ;;  %v763_v42 = vmul.f32 %v755_v40, %v755_v40  ;;  %v764_v47 = vpack.c.bf16 %v760_v37, %v760_v37  ;;  %v766_v48 = vpack.c.bf16 %v762_v38, %v762_v38 }
 0x130   : > { %v716_v43 = vpop.f32.mrf.mxu0  ;;  %v757_v44 = vpop.f32.mrf.mxu1 }
 0x131   : > { %v765_v45 = vpack.c.bf16 %v761_v41, %v761_v41  ;;  %v767_v46 = vpack.c.bf16 %v763_v42, %v763_v42 }
 0x132   : > { %v717_v49 = vpop.f32.mrf.mxu0  ;;  %v758_v50 = vpop.f32.mrf.mxu1 }
 0x133   : > { %1056 = vmatprep.mubr.bf16.mxu0 %v765_v45  ;;  %1096 = vmatprep.mubr.bf16.mxu1 %v767_v46 }
 0x134   : > { %1057 = vmatmul.mubr.bf16.vlgmr.msra.gmra.mxu0 %v764_v47  ;;  %1097 = vmatmul.mubr.bf16.vlgmr.msra.gmra.mxu1 %v766_v48 }
 0x1f4   : > { %v1359_v51 = vpop.f32.mrf.mxu0  ;;  %v1381_v52 = vpop.f32.mrf.mxu1 }
 0x1f6   : > { %v1360_v53 = vpop.f32.mrf.mxu0  ;;  %v1382_v54 = vpop.f32.mrf.mxu1 }
 0x1f7   : > { %v1361_v55 = vadd.f32 %v1360_v53, %v1359_v51  ;;  %v1383_v56 = vadd.f32 %v1382_v54, %v1381_v52 }
 0x1f8   : > { %v1362_v57 = vpop.f32.mrf.mxu0  ;;  %v1384_v58 = vpop.f32.mrf.mxu1 }
 0x1f9   : > { %v1099_v59 = vadd.f32 %v1383_v56, %v1361_v55 }
 0x1fa   : > { %v1363_v60 = vpop.f32.mrf.mxu0  ;;  %v1385_v61 = vpop.f32.mrf.mxu1 }
 0x1fb   : > { %v1104_v62 = vmax.f32 %v1099_v59, 1e-10 }
 0x1fd   : > { %1564 = vlog2.f32 %v1104_v62 }
 0x20a   : > { %v1565_v63 = vpop.eup %1564 }
 0x20b   : > { %v1106_v0 = vmul.f32 0.6931472, %v1565_v63 }
 0x20d   : > { %v1107_v2 = vmul.f32 4.3429446, %v1106_v0 }
 0x20f   : > { %v1115_v4 = vmul.f32 %v1338_v1, %v1107_v2 }
 0x211   : > { %v1123_v5 = vadd.f32 %v1339_v3, %v1115_v4 }
 0x213   : > { %1124 = vst [vmem:[%s284_s30] sm:$0x1f] %v1123_v5 }
 0x214 PF: > { %s17_s20 = sadd.s32 1, %s1648_s20   ;;  %s1881_s18 = smov %s1644_s19 }
 0x215   : > { %p14_p4 = scmp.ge.s32.totalorder %s17_s20, 4   ;;  %s1882_s19 = smov %s1884_s22 }
 0x217   :  { %16 = sbr.rel (!%p14_p4) target bundleno = 3 (0x3), region = 79 }
 0x21c   :  { %1150 = vsyncpa [#allocation3], 1 }
 0x21d   :  { %1152 = vsyncpa [#allocation3 + $0x1], 1 }
 0x21e   :  { %1153 = vsyncpa [#allocation5], 1 }

// kernel: _lambda_.3
= control target key start
LH: loop header
LB: loop body
LE: loop exit
PB: predicated region body
PF: predicated region fallthrough
CT: control target
= control target key end

     0   :  { %15 = vsyncpa [#allocation3], 0  ;;  %s3296_s0 = inlined_call_operand.vmem [shape: f32[2,20,32], index: 0, kind: input, shape index: {}]   ;;  %s3297_s1 = inlined_call_operand.hbm [shape: bf16[3,9,20], index: 1, kind: input, shape index: {}]   ;;  %s3298_s2 = inlined_call_operand.vmem [shape: bf16[3,32,256], index: 2, kind: input, shape index: {}]   ;;  %s3299_s3 = inlined_call_operand.vmem [shape: f32[1,256], index: 3, kind: input, shape index: {}]   ;;  %s3300_s4 = inlined_call_operand.hbm [shape: bf16[3,5,9], index: 4, kind: input, shape index: {}]   ;;  %s3301_s5 = inlined_call_operand.vmem [shape: bf16[3,256,256], index: 5, kind: input, shape index: {}]   ;;  %s3302_s6 = inlined_call_operand.vmem [shape: f32[1,256], index: 6, kind: input, shape index: {}]   ;;  %s3303_s7 = inlined_call_operand.hbm [shape: f32[256,32], index: 7, kind: input, shape index: {}]   ;;  %s3304_s8 = inlined_call_operand.vmem [shape: f32[32,8], index: 8, kind: input, shape index: {}]   ;;  %s3305_s9 = inlined_call_operand.vmem [shape: f32[1,8], index: 9, kind: input, shape index: {}]   ;;  %s3306_s10 = inlined_call_operand.hbm [shape: f32[2,1,8], index: 10, kind: output, shape index: {}]  }
   0x1   :  { %16 = vsyncpa [#allocation6], 0 }
   0x2   :  { %17 = vsyncpa [#allocation4], 0 }
   0x3   :  { %19 = vsyncpa [#allocation4 + $0x1], 0  ;;  %s2744_s13 = smov 0   ;;  %s2746_s14 = smov 0  }
   0x4   :  { %s2748_s15 = smov 0   ;;  %s2750_s16 = smov 0  }
   0x5 LB: > { %s2765_s17 = sadd.s32 4294967295, %s2675_s16   ;;  %s1990_s18 = sadd.s32 4294967294, %s2675_s16   ;;  %s2675_s16 = sphi %s2750_s16, %s3324_s16   ;;  %s2671_s15 = sphi %s2748_s15, %s3323_s15   ;;  %s2667_s14 = sphi %s2746_s14, %s3322_s14   ;;  %s2663_s13 = sphi %s2744_s13, %s3321_s13  }
   0x6   : > { %s2769_s19 = sadd.s32 1, %s2675_s16   ;;  %s247_s20 = sadd.s32 1, %s2671_s15 }
   0x7   : > { %s244_s21 = ssub.s32 %s2675_s16, %s2769_s19  ;;  %p257_p0 = scmp.ne.s32.totalorder %s2671_s15, %s2667_s14 }
   0x8   : > { %p245_p1 = scmp.eq.s32.totalorder %s244_s21, 0  ;;  %p258_p2 = scmp.eq.s32.totalorder %s2765_s17, 1 }
   0x9   : > { %p263_p3 = scmp.ne.s32.totalorder %s2667_s14, %s2663_s13  ;;  %p264_p4 = scmp.eq.s32.totalorder %s1990_s18, 1 }
   0xa   : > { %s2780_s22 = scalar_select %p245_p1, %s2671_s15, %s247_s20  }
   0xb   : > { %p2782_p5 = por %p258_p2, %p257_p0  ;;  %p2786_p6 = por %p264_p4, %p263_p3 }
   0xc   : > { %3309 = sst [smem:[#allocation12_spill]] %s2780_s22  ;;  %p1991_p7 = scmp.ge.s32.totalorder %s2675_s16, 1 }
   0xd   : > { %s3310_s23 = scalar_select %p2782_p5, 1, 0 }
   0xe   : > { %s3311_s24 = scalar_select %p2786_p6, 1, 0 }
   0xf   : > { %p271_p8 = scmp.lt.s32.totalorder %s2675_s16, 3  ;;  %p3307_p9 = scmp.eq.s32.totalorder %s2765_s17, 0 }
  0x10   : > { %s2677_s26 = smov [#allocation5]   ;;  %s2678_s29 = smov [#allocation2]  }
  0x11   : > { %p2793_p10 = pnand %p1991_p7, %p271_p8  ;;  %s302_s27 = sshll.u32 %s2677_s26, 4  ;;  %s303_s27 = int_to_ptr.vmem [resolvable:$true] %s302_s27 }
  0x12   : > { %s283_s30 = sshll.u32 %s2678_s29, 4  ;;  %s2679_s11 = smov [#allocation7]   ;;  %s284_s30 = int_to_ptr.vmem [resolvable:$true] %s283_s30 }
  0x13   : > { %p2296_p11 = pneg %p2793_p10  ;;  %s321_s12 = sshll.u32 %s2679_s11, 4  ;;  %s322_s12 = int_to_ptr.vmem [resolvable:$true] %s321_s12 }
  0x14   : > { %s2540_s18 = scalar_lea.vmem %s303_s27, 192  ;;  %p2548_p3 = scmp.lt.s32.totalorder %s303_s27, %s303_s27 }
  0x15   : > { %p2801_p12 = pnand %p3307_p9, %p2296_p11  ;;  %p2541_p0 = scmp.ne.s32.totalorder %s303_s27, %s2540_s18 }
  0x16   : > { %p2549_p4 = scmp.lt.s32.totalorder %s2540_s18, %s2540_s18 }
  0x17   : > { %p2531_p13 = pneg %p2801_p12 }
  0x18   : > { %p2550_p7 = por %p2549_p4, %p2548_p3 }
  0x19   : > { %p2543_p1 = pnand %p2541_p0, %p2531_p13 }
  0x1b   : > { %p2544_p2 = pneg %p2543_p1 }
  0x1d   : > { %p2551_p8 = pnand %p2550_p7, %p2544_p2 }
  0x1f   : > { %2554 = shalt.err (!%p2551_p8)
}
  0x20   : > { %s2680_s20 = smov 64   ;;  %s2681_s21 = smov 4  }
  0x21   : > { %2302 = dma.hbm_to_vmem [thread:$0]  (!%p2801_p12), %s3300_s4, 192, %s303_s27, [#allocation6], %s2680_s20, %s2680_s20, %s2681_s21  }
  0x22   : > { %s2566_s11 = scalar_lea.vmem %s284_s30, 384  ;;  %p2574_p9 = scmp.lt.s32.totalorder %s284_s30, %s284_s30 }
  0x23   : > { %p2567_p11 = scmp.ne.s32.totalorder %s284_s30, %s2566_s11  ;;  %p2575_p6 = scmp.lt.s32.totalorder %s2566_s11, %s2566_s11 }
  0x25   : > { %p2569_p0 = pnand %p2567_p11, %p2531_p13  ;;  %p2576_p3 = por %p2575_p6, %p2574_p9 }
  0x27   : > { %p2570_p1 = pneg %p2569_p0 }
  0x29   : > { %p2577_p2 = pnand %p2576_p3, %p2570_p1 }
  0x2b   : > { %2580 = shalt.err (!%p2577_p2)
}
  0x2c   : > { %2299 = dma.hbm_to_vmem [thread:$0]  (!%p2801_p12), %s3297_s1, 384, %s284_s30, [#allocation3], %s2680_s20, %s2680_s20, %s2681_s21  }
  0x2d   : > { %s2592_s27 = scalar_lea.vmem %s322_s12, 4096  ;;  %p2600_p11 = scmp.lt.s32.totalorder %s322_s12, %s322_s12 }
  0x2e   : > { %p2593_p4 = scmp.ne.s32.totalorder %s322_s12, %s2592_s27  ;;  %p2601_p0 = scmp.lt.s32.totalorder %s2592_s27, %s2592_s27 }
  0x30   : > { %p2595_p7 = pnand %p2593_p4, %p2531_p13  ;;  %p2602_p5 = por %p2601_p0, %p2600_p11 }
  0x32   : > { %p2596_p8 = pneg %p2595_p7 }
  0x34   : > { %p2603_p6 = pnand %p2602_p5, %p2596_p8 }
  0x36   : > { %2606 = shalt.err (!%p2603_p6)
}
  0x37   : > { %s2682_s26 = smov 128   ;;  %s2683_s29 = smov 8  }
  0x38   : > { %2305 = dma.hbm_to_vmem [thread:$0]  (!%p2801_p12), %s3303_s7, 4096, %s322_s12, [#allocation6], %s2682_s26, %s2682_s26, %s2683_s29  }
  0x39   : > { %351 = sbr.rel (%p2793_p10) target bundleno = 1779 (0x6f3), region = 60  ;;  %p3314_p9 = scmp.eq.s32.totalorder (!%p2793_p10), %s2765_s17, 0 }
  0x3e   : > { %2650 = dma.done.wait (%p3314_p9), [#allocation3], 384   ;;  %p3315_p13 = pmov %p3314_p9 }
  0x3f   : > { %p3316_p5 = pmov %p3314_p9 }
  0x40   : > { %2652 = vsyncadd (%p3315_p13), [#allocation3], 4294966912 }
  0x41   : > { %2654 = dma.done.wait (%p3316_p5), [#allocation6], 4288   ;;  %p3317_p1 = pmov %p3316_p5 }
  0x42   : > { %p396_p3 = scmp.lt.s32.totalorder %s2765_s17, 1  ;;  %v2684_v0 = vmov 0.0   ;;  %vm2685_vm0 = vmmov 0   ;;  %vm418_vm1 = vcmask 1041408   ;;  %v2362_v6 = vld [vmem:[%s3298_s2 + $0x14] ss:$8 sps:$4 sm:$0xff]   ;;  %v789_v43 = vlaneseq }
  0x43   : > { %2656 = vsyncadd (%p3317_p1), [#allocation6], 4294963008  ;;  %2246 = vmatprep.subr.bf16.mxu0 %v2684_v0  ;;  %2250 = vmatprep.mubr.msk.bf16.mxu0 %vm2685_vm0, %v2684_v0  ;;  %v2360_v8 = vld [vmem:[#allocation2] sm:$0x1f]   ;;  %vm414_vm2 = vcmask 162816   ;;  %v2686_v14 = vmov 0  }
  0x44   : > { %s397_s25 = scalar_select %p396_p3, %s2765_s17, 1  ;;  %628 = vmatprep.subr.bf16.mxu1 %v2362_v6  ;;  %v2361_v9 = vld [vmem:[#allocation2 + $0x8] sm:$0x1f]   ;;  %v2364_v10 = vld [vmem:[%s3298_s2 + $0x10] ss:$8 sps:$4 sm:$0xff]   ;;  %648 = vmatprep.mubr.bf16.mxu1 %v2686_v14  ;;  %vm546_vm3 = vcmask 261120  }
  0x45   : > { %629 = vmatpush1.bf16.msra.mxu1 %v2364_v10  ;;  %v2365_v11 = vld [vmem:[%s3298_s2 + $0x4] ss:$8 sps:$4 sm:$0xff]   ;;  %v2367_v12 = vld [vmem:[%s3298_s2] ss:$8 sps:$4 sm:$0xff]   ;;  %v2370_v13 = vld [vmem:[%s3298_s2 + $0x34] ss:$8 sps:$4 sm:$0xff]  }
  0x46   : > { %s2281_s28 = smul.u32 24, %s397_s25  ;;  %630 = vmatprep.subr.bf16.mxu1 %v2365_v11  ;;  %v2368_v15 = vld [vmem:[%s3298_s2 + $0x30] ss:$8 sps:$4 sm:$0xff]   ;;  %v2373_v16 = vld [vmem:[%s3298_s2 + $0x24] ss:$8 sps:$4 sm:$0xff]   ;;  %v2905_v45 = vshrl.u32 %v789_v43, 7 }
  0x47   : > { %v2371_v17 = vld [vmem:[%s3298_s2 + $0x20] ss:$8 sps:$4 sm:$0xff]   ;;  %v2374_v28 = vld [vmem:[#allocation2 + $0x10] sm:$0x1f]   ;;  %v2380_v31 = vld [vmem:[%s3298_s2 + $0x44] ss:$8 sps:$4 sm:$0xff]  }
  0x48   : > { %s400_s20 = scalar_lea.vmem %s3296_s0, %s2281_s28  ;;  %v2377_v29 = vld [vmem:[%s3298_s2 + $0x54] ss:$8 sps:$4 sm:$0xff]   ;;  %v2375_v30 = vld [vmem:[%s3298_s2 + $0x50] ss:$8 sps:$4 sm:$0xff]   ;;  %v2378_v32 = vld [vmem:[%s3298_s2 + $0x40] ss:$8 sps:$4 sm:$0xff]  }
  0x49   : > { %v404_v1 = vld [vmem:[%s400_s20 + $0x10] sm:$0xf]  ;;  %v402_v2 = vld [vmem:[%s400_s20] sm:$0xff]  ;;  %v403_v4 = vld [vmem:[%s400_s20 + $0x8] sm:$0xff]  ;;  %631 = vmatpush1.bf16.msra.mxu1 %v2367_v12  ;;  %v791_v47 = vsub.s32 0, %v2905_v45  ;;  %v795_v51 = vsub.s32 1, %v2905_v45 }
  0x4a   : > { %v406_v3 = vpack.c.bf16 %v404_v1, %v404_v1  ;;  %v405_v7 = vpack.c.bf16 %v403_v4, %v402_v2  ;;  %752 = vmatprep.subr.bf16.mxu1 %v2377_v29  ;;  %v787_v49 = vld [vmem:[%s3299_s3] sm:$0x3]  ;;  %vm814_vm4 = vcmask 1043456   ;;  %vm815_vm5 = vcmask 1044480   ;;  %v2437_v29 = vld [vmem:[%s3301_s5 + $0x54] ss:$8 sps:$4 sm:$0xff]  }
  0x4b   : > { %v792_v55 = vrot.slane %v787_v49, %v791_v47  ;;  %v796_v59 = vrot.slane %v787_v49, %v795_v51  ;;  %vm810_vm6 = vcmask 72704   ;;  %v2444_v43 = vld [vmem:[%s3301_s5 + $0x20] ss:$8 sps:$4 sm:$0xff]   ;;  %v2447_v49 = vld [vmem:[%s3301_s5 + $0x10] ss:$8 sps:$4 sm:$0xff]   ;;  %s394_s21 = sand.u32 1, %s2667_s14  }
  0x4c   : > { %v420_v5 = vsel %vm418_vm1, %v406_v3, 0  ;;  %s2194_s26 = sshll.u32 %s2765_s17, 4  ;;  %s395_s29 = scalar_lea.vmem [#allocation8], %s394_s21  ;;  %vm1889_vm7 = vcmask 57344  }
  0x4d   : > { %2247 = vmatpush3.bf16.msra.mxu0 %v420_v5  ;;  %s1904_s11 = sshll.u32 %s395_s29, 4  ;;  %s3261_s28 = scalar_lea.hbm %s3306_s10, %s2194_s26  ;;  %s1905_s11 = int_to_ptr.vmem [resolvable:$true] %s1904_s11 }
  0x4e   : > { %2248 = vmatprep.subr.bf16.mxu0 %v2684_v0  ;;  %s1892_s30 = scalar_lea.sflag [#allocation4], %s394_s21  ;;  %s2607_s12 = scalar_lea.vmem %s1905_s11, 16 }
  0x4f   : > { %p2608_p10 = scmp.ne.s32.totalorder %s1905_s11, %s2607_s12  ;;  %p3318_p12 = scmp.ne.s32.totalorder %s3310_s23, 0 }
  0x50   : > { %s2688_s17 = smov [#allocation8]  }
  0x51   : > { %2249 = vmatpush3.bf16.msra.mxu0 %v405_v7  ;;  %p2609_p2 = pnand %p2608_p10, %p3318_p12  ;;  %s2611_s20 = sshll.u32 %s2688_s17, 4  ;;  %s2612_s20 = int_to_ptr.vmem [resolvable:$false] %s2611_s20 }
  0x52   : > { %2254 = vmatprep.subr.bf16.mxu0 %v2684_v0  ;;  %s2613_s18 = scalar_lea.vmem %s2612_s20, 32  ;;  %p2614_p7 = scmp.lt.s32.totalorder %s1905_s11, %s2612_s20 }
  0x53   : > { %p2610_p4 = pneg %p2609_p2  ;;  %p2615_p8 = scmp.lt.s32.totalorder %s2613_s18, %s2607_s12 }
  0x54   : > { %2251 = vmatmul.mubr.msk.bf16.vlgmr.msra.gmra.mxu0 %vm414_vm2, %v2360_v8  ;;  %v2687_v8 = vmov 65535  }
  0x55   : > { %2255 = vmatpush3.bf16.msra.mxu0 %v420_v5  ;;  %2258 = vmatprep.mubr.msk.bf16.mxu0 %vm2685_vm0, %v2684_v0  ;;  %p2616_p11 = por %p2615_p8, %p2614_p7 }
  0x56   : > { %2256 = vmatprep.subr.bf16.mxu0 %v2684_v0 }
  0x57   : > { %p2617_p0 = pnand %p2616_p11, %p2610_p4 }
  0x59   : > { %2257 = vmatpush3.bf16.msra.mxu0 %v405_v7 }
  0x5a   : > { %562 = vmatprep.subr.bf16.mxu0 %v2370_v13 }
  0x5c   : > { %2259 = vmatmul.mubr.msk.bf16.vlgmr.msra.gmra.mxu0 %vm414_vm2, %v2361_v9  ;;  %v816_v9 = vsel %vm814_vm4, 4294967295, %v2687_v8  ;;  %v2419_v8 = vld [vmem:[%s3301_s5 + $0x1b4] ss:$8 sps:$4 sm:$0xff]  }
  0x5d   : > { %582 = vmatprep.mubr.bf16.mxu0 %v2686_v14  ;;  %563 = vmatpush1.bf16.msra.mxu0 %v2368_v15  ;;  %v817_v15 = vsel %vm815_vm5, %v816_v9, 0  ;;  %v2467_v9 = vld [vmem:[%s3301_s5 + $0xb4] ss:$8 sps:$4 sm:$0xff]  }
  0x5e   : > { %564 = vmatprep.subr.bf16.mxu0 %v2373_v16 }
  0x61   : > { %565 = vmatpush1.bf16.msra.mxu0 %v2371_v17  ;;  %v2383_v17 = vld [vmem:[%s3301_s5 + $0x174] ss:$8 sps:$4 sm:$0xff]  }
  0x62   : > { %2262 = vmatprep.subr.bf16.mxu0 %v2684_v0 }
 0x114   : > { %v456_v18 = vpop.f32.mrf.mxu0 }
 0x116   : > { %v2252_v19 = vpop.f32.mrf.mxu0 }
 0x118   : > { %v459_v20 = vpop.f32.mrf.mxu0 }
 0x119   : > { %v463_v21 = vpack.c.bf16 %v459_v20, %v456_v18  ;;  %v2431_v18 = vld [vmem:[%s3301_s5 + $0x74] ss:$8 sps:$4 sm:$0xff]   ;;  %v809_v20 = vld [vmem:[#allocation5] sm:$0x7] }
 0x11a   : > { %v2253_v22 = vpop.f32.mrf.mxu0 }
 0x11b   : > { %2018 = vmatmul.mubr.msk.bf16.vlgmr.msra.gmra.mxu1 %vm546_vm3, %v463_v21  ;;  %v900_v21 = vld [vmem:[#allocation5 + $0x4] sm:$0x7]  ;;  %v2381_v22 = vld [vmem:[%s3301_s5 + $0x170] ss:$8 sps:$4 sm:$0xff]  }
 0x11c   : > { %v513_v23 = vpop.f32.mrf.mxu0  ;;  %772 = vmatprep.mubr.bf16.mxu1 %v2686_v14  ;;  %753 = vmatpush1.bf16.msra.mxu1 %v2375_v30  ;;  %v2387_v30 = vld [vmem:[%s3301_s5 + $0x150] ss:$8 sps:$4 sm:$0xff]  }
 0x11d   : > { %754 = vmatprep.subr.bf16.mxu1 %v2380_v31  ;;  %v2435_v31 = vld [vmem:[%s3301_s5 + $0x50] ss:$8 sps:$4 sm:$0xff]  }
 0x11e   : > { %v2260_v24 = vpop.f32.mrf.mxu0 }
 0x11f   : > { %v2386_v24 = vld [vmem:[%s3301_s5 + $0x164] ss:$8 sps:$4 sm:$0xff]  }
 0x120   : > { %v516_v25 = vpop.f32.mrf.mxu0  ;;  %755 = vmatpush1.bf16.msra.mxu1 %v2378_v32  ;;  %v2392_v32 = vld [vmem:[%s3301_s5 + $0x144] ss:$8 sps:$4 sm:$0xff]  }
 0x121   : > { %v520_v26 = vpack.c.bf16 %v516_v25, %v513_v23  ;;  %v2429_v23 = vld [vmem:[%s3301_s5 + $0x70] ss:$8 sps:$4 sm:$0xff]   ;;  %v2434_v25 = vld [vmem:[%s3301_s5 + $0x64] ss:$8 sps:$4 sm:$0xff]  }
 0x122   : > { %v2261_v27 = vpop.f32.mrf.mxu0 }
 0x123   : > { %2013 = vmatmul.mubr.msk.bf16.vlgmr.msra.gmra.mxu0 %vm546_vm3, %v520_v26  ;;  %v2384_v26 = vld [vmem:[%s3301_s5 + $0x160] ss:$8 sps:$4 sm:$0xff]  }
 0x124   : > { %2263 = vmatpush3.bf16.msra.mxu0 %v420_v5  ;;  %2266 = vmatprep.mubr.msk.bf16.mxu0 %vm2685_vm0, %v2684_v0  ;;  %v2432_v27 = vld [vmem:[%s3301_s5 + $0x60] ss:$8 sps:$4 sm:$0xff]  }
 0x125   : > { %2264 = vmatprep.subr.bf16.mxu0 %v2684_v0 }
 0x128   : > { %2265 = vmatpush3.bf16.msra.mxu0 %v405_v7 }
 0x12b   : > { %2267 = vmatmul.mubr.msk.bf16.vlgmr.msra.gmra.mxu0 %vm414_vm2, %v2374_v28  ;;  %v2389_v28 = vld [vmem:[%s3301_s5 + $0x154] ss:$8 sps:$4 sm:$0xff]  }
 0x12c   : > { %856 = vmatprep.mubr.bf16.mxu0 %v2686_v14 }
 0x1db   : > { %v650_v42 = vpop.f32.mrf.mxu1 }
 0x1dd   : > { %v652_v44 = vpop.f32.mrf.mxu1 }
 0x1df   : > { %v654_v46 = vpop.f32.mrf.mxu1 }
 0x1e1   : > { %v656_v48 = vpop.f32.mrf.mxu1 }
 0x1e3   : > { %v584_v33 = vpop.f32.mrf.mxu0 }
 0x1e4   : > { %v651_v50 = vadd.f32 %v650_v42, %v584_v33  ;;  %v2440_v33 = vld [vmem:[%s3301_s5 + $0x44] ss:$8 sps:$4 sm:$0xff]   ;;  %v2396_v42 = vld [vmem:[%s3301_s5 + $0x120] ss:$8 sps:$4 sm:$0xff]  }
 0x1e5   : > { %v586_v34 = vpop.f32.mrf.mxu0 }
 0x1e6   : > { %v653_v53 = vadd.f32 %v652_v44, %v586_v34  ;;  %v2390_v34 = vld [vmem:[%s3301_s5 + $0x140] ss:$8 sps:$4 sm:$0xff]   ;;  %v2401_v44 = vld [vmem:[%s3301_s5 + $0x114] ss:$8 sps:$4 sm:$0xff]  }
 0x1e7   : > { %v588_v35 = vpop.f32.mrf.mxu0 }
 0x1e8   : > { %v655_v57 = vadd.f32 %v654_v46, %v588_v35  ;;  %v2438_v35 = vld [vmem:[%s3301_s5 + $0x40] ss:$8 sps:$4 sm:$0xff]   ;;  %v2449_v46 = vld [vmem:[%s3301_s5 + $0x14] ss:$8 sps:$4 sm:$0xff]  }
 0x1e9   : > { %v590_v36 = vpop.f32.mrf.mxu0 }
 0x1ea   : > { %v657_v61 = vadd.f32 %v656_v48, %v590_v36  ;;  %v2395_v36 = vld [vmem:[%s3301_s5 + $0x134] ss:$8 sps:$4 sm:$0xff]   ;;  %v2399_v48 = vld [vmem:[%s3301_s5 + $0x110] ss:$8 sps:$4 sm:$0xff]  }
 0x1eb   : > { %v704_v37 = vpop.f32.mrf.mxu0 }
 0x1ed   : > { %v2268_v38 = vpop.f32.mrf.mxu0 }
 0x1ee   : > { %v2393_v38 = vld [vmem:[%s3301_s5 + $0x130] ss:$8 sps:$4 sm:$0xff]  }
 0x1ef   : > { %v707_v39 = vpop.f32.mrf.mxu0 }
 0x1f0   : > { %v711_v40 = vpack.c.bf16 %v707_v39, %v704_v37  ;;  %v2443_v37 = vld [vmem:[%s3301_s5 + $0x34] ss:$8 sps:$4 sm:$0xff]   ;;  %v2441_v39 = vld [vmem:[%s3301_s5 + $0x30] ss:$8 sps:$4 sm:$0xff]  }
 0x1f1   : > { %v2269_v41 = vpop.f32.mrf.mxu0 }
 0x1f2   : > { %2029 = vmatmul.mubr.msk.bf16.vlgmr.msra.gmra.mxu1 %vm546_vm3, %v711_v40  ;;  %v2398_v40 = vld [vmem:[%s3301_s5 + $0x124] ss:$8 sps:$4 sm:$0xff]  }
 0x1f3   : > { %936 = vmatprep.mubr.bf16.mxu1 %v2686_v14  ;;  %v2446_v41 = vld [vmem:[%s3301_s5 + $0x24] ss:$8 sps:$4 sm:$0xff]  }
 0x2b2   : > { %v774_v52 = vpop.f32.mrf.mxu1 }
 0x2b3   : > { %v783_v54 = vadd.f32 %v774_v52, %v651_v50  ;;  %v2404_v50 = vld [vmem:[%s3301_s5 + $0x104] ss:$8 sps:$4 sm:$0xff]  }
 0x2b4   : > { %v776_v56 = vpop.f32.mrf.mxu1  ;;  %v2452_v52 = vld [vmem:[%s3301_s5 + $0x4] ss:$8 sps:$4 sm:$0xff]  }
 0x2b5   : > { %v784_v58 = vadd.f32 %v776_v56, %v653_v53  ;;  %v799_v62 = vadd.f32 %v792_v55, %v783_v54  ;;  %v2402_v53 = vld [vmem:[%s3301_s5 + $0x100] ss:$8 sps:$4 sm:$0xff]   ;;  %v2455_v56 = vld [vmem:[%s3301_s5 + $0xf4] ss:$8 sps:$4 sm:$0xff]  }
 0x2b6   : > { %v778_v60 = vpop.f32.mrf.mxu1  ;;  %v2450_v54 = vld [vmem:[%s3301_s5] ss:$8 sps:$4 sm:$0xff]  }
 0x2b7   : > { %v785_v63 = vadd.f32 %v778_v60, %v655_v57  ;;  %v800_v2 = vadd.f32 %v796_v59, %v784_v58  ;;  %v803_v5 = vmax.f32 %v799_v62, 0.0  ;;  %v2405_v57 = vld [vmem:[%s3301_s5 + $0x1f0] ss:$8 sps:$4 sm:$0xff]   ;;  %v2458_v60 = vld [vmem:[%s3301_s5 + $0xe4] ss:$8 sps:$4 sm:$0xff]  }
 0x2b8   : > { %v780_v1 = vpop.f32.mrf.mxu1  ;;  %v2453_v58 = vld [vmem:[%s3301_s5 + $0xf0] ss:$8 sps:$4 sm:$0xff]   ;;  %v2456_v62 = vld [vmem:[%s3301_s5 + $0xe0] ss:$8 sps:$4 sm:$0xff]  }
 0x2b9   : > { %v801_v3 = vadd.f32 %v792_v55, %v785_v63  ;;  %v786_v4 = vadd.f32 %v780_v1, %v657_v61  ;;  %v804_v10 = vmax.f32 %v800_v2, 0.0  ;;  %v2407_v55 = vld [vmem:[%s3301_s5 + $0x1f4] ss:$8 sps:$4 sm:$0xff]   ;;  %v2408_v61 = vld [vmem:[%s3301_s5 + $0x1e0] ss:$8 sps:$4 sm:$0xff]  }
 0x2ba   : > { %v2413_v63 = vld [vmem:[%s3301_s5 + $0x1d4] ss:$8 sps:$4 sm:$0xff]   ;;  %v2411_v2 = vld [vmem:[%s3301_s5 + $0x1d0] ss:$8 sps:$4 sm:$0xff]  }
 0x2bb   : > { %v805_v6 = vmax.f32 %v801_v3, 0.0  ;;  %v802_v7 = vadd.f32 %v796_v59, %v786_v4  ;;  %v2410_v59 = vld [vmem:[%s3301_s5 + $0x1e4] ss:$8 sps:$4 sm:$0xff]   ;;  %v2461_v1 = vld [vmem:[%s3301_s5 + $0xd4] ss:$8 sps:$4 sm:$0xff]  }
 0x2bc   : > { %v2459_v3 = vld [vmem:[%s3301_s5 + $0xd0] ss:$8 sps:$4 sm:$0xff]   ;;  %v2416_v4 = vld [vmem:[%s3301_s5 + $0x1c4] ss:$8 sps:$4 sm:$0xff]  }
 0x2bd   : > { %v807_v11 = vpack.c.bf16 %v805_v6, %v803_v5  ;;  %v806_v12 = vmax.f32 %v802_v7, 0.0  ;;  %v2464_v5 = vld [vmem:[%s3301_s5 + $0xc4] ss:$8 sps:$4 sm:$0xff]   ;;  %v2414_v6 = vld [vmem:[%s3301_s5 + $0x1c0] ss:$8 sps:$4 sm:$0xff]  }
 0x2be   : > { %v2462_v7 = vld [vmem:[%s3301_s5 + $0xc0] ss:$8 sps:$4 sm:$0xff]  }
 0x2bf   : > { %v808_v13 = vpack.c.bf16 %v806_v12, %v804_v10  ;;  %v2925_v19 = vand.u32 %v817_v15, %v807_v11  ;;  %v2417_v10 = vld [vmem:[%s3301_s5 + $0x1b0] ss:$8 sps:$4 sm:$0xff]   ;;  %v2422_v12 = vld [vmem:[%s3301_s5 + $0x1a4] ss:$8 sps:$4 sm:$0xff]  }
 0x2c0   : > { %v2465_v11 = vld [vmem:[%s3301_s5 + $0xb0] ss:$8 sps:$4 sm:$0xff]  }
 0x2c1   : > { %v2917_v16 = vand.u32 %v817_v15, %v808_v13  ;;  %v2470_v13 = vld [vmem:[%s3301_s5 + $0xa4] ss:$8 sps:$4 sm:$0xff]   ;;  %v2420_v15 = vld [vmem:[%s3301_s5 + $0x1a0] ss:$8 sps:$4 sm:$0xff]  }
 0x2c3   : > { %838 = vmatprep.subr.bf16.mxu0 %v2917_v16  ;;  %918 = vmatprep.subr.bf16.mxu1 %v2917_v16 }
 0x2c4   : > { %839 = vmatpush1.bf16.msra.mxu0 %v2925_v19  ;;  %919 = vmatpush1.bf16.msra.mxu1 %v2925_v19 }
 0x2c5   : > { %1140 = vmatprep.subr.bf16.mxu0 %v2383_v17  ;;  %1341 = vmatprep.subr.bf16.mxu1 %v2431_v18  ;;  %v2468_v17 = vld [vmem:[%s3301_s5 + $0xa0] ss:$8 sps:$4 sm:$0xff]   ;;  %v2425_v18 = vld [vmem:[%s3301_s5 + $0x194] ss:$8 sps:$4 sm:$0xff]  }
 0x2c7   : > { %2030 = vmatmul.mubr.msk.bf16.vlgmr.msra.gmra.mxu0 %vm810_vm6, %v809_v20  ;;  %2031 = vmatmul.mubr.msk.bf16.vlgmr.msra.gmra.mxu1 %vm810_vm6, %v900_v21  ;;  %v2473_v20 = vld [vmem:[%s3301_s5 + $0x94] ss:$8 sps:$4 sm:$0xff]   ;;  %v2423_v21 = vld [vmem:[%s3301_s5 + $0x190] ss:$8 sps:$4 sm:$0xff]  }
 0x2c8   : > { %1141 = vmatpush1.bf16.msra.mxu0 %v2381_v22  ;;  %1342 = vmatpush1.bf16.msra.mxu1 %v2429_v23  ;;  %v2471_v22 = vld [vmem:[%s3301_s5 + $0x90] ss:$8 sps:$4 sm:$0xff]   ;;  %v2428_v23 = vld [vmem:[%s3301_s5 + $0x184] ss:$8 sps:$4 sm:$0xff]  }
 0x2c9   : > { %1142 = vmatprep.subr.bf16.mxu0 %v2386_v24  ;;  %1343 = vmatprep.subr.bf16.mxu1 %v2434_v25  ;;  %v2426_v24 = vld [vmem:[%s3301_s5 + $0x180] ss:$8 sps:$4 sm:$0xff]   ;;  %v2476_v25 = vld [vmem:[%s3301_s5 + $0x84] ss:$8 sps:$4 sm:$0xff]  }
 0x2cc   : > { %1143 = vmatpush1.bf16.msra.mxu0 %v2384_v26  ;;  %1344 = vmatpush1.bf16.msra.mxu1 %v2432_v27  ;;  %v2474_v26 = vld [vmem:[%s3301_s5 + $0x80] ss:$8 sps:$4 sm:$0xff]   ;;  %v2479_v27 = vld [vmem:[%s3301_s5 + $0x274] ss:$8 sps:$4 sm:$0xff]  }
 0x2cd   : > { %1144 = vmatprep.subr.bf16.mxu0 %v2389_v28  ;;  %1345 = vmatprep.subr.bf16.mxu1 %v2437_v29 }
 0x2d0   : > { %1145 = vmatpush1.bf16.msra.mxu0 %v2387_v30  ;;  %1346 = vmatpush1.bf16.msra.mxu1 %v2435_v31 }
 0x2d1   : > { %1146 = vmatprep.subr.bf16.mxu0 %v2392_v32  ;;  %1347 = vmatprep.subr.bf16.mxu1 %v2440_v33 }
 0x2d4   : > { %1147 = vmatpush1.bf16.msra.mxu0 %v2390_v34  ;;  %1348 = vmatpush1.bf16.msra.mxu1 %v2438_v35 }
 0x2d5   : > { %1148 = vmatprep.subr.bf16.mxu0 %v2395_v36  ;;  %1349 = vmatprep.subr.bf16.mxu1 %v2443_v37  ;;  %v2477_v37 = vld [vmem:[%s3301_s5 + $0x270] ss:$8 sps:$4 sm:$0xff]  }
 0x2d8   : > { %1149 = vmatpush1.bf16.msra.mxu0 %v2393_v38  ;;  %1350 = vmatpush1.bf16.msra.mxu1 %v2441_v39  ;;  %v2482_v38 = vld [vmem:[%s3301_s5 + $0x264] ss:$8 sps:$4 sm:$0xff]  }
 0x2d9   : > { %1150 = vmatprep.subr.bf16.mxu0 %v2398_v40  ;;  %1351 = vmatprep.subr.bf16.mxu1 %v2446_v41  ;;  %v2480_v41 = vld [vmem:[%s3301_s5 + $0x260] ss:$8 sps:$4 sm:$0xff]  }
 0x2dc   : > { %1151 = vmatpush1.bf16.msra.mxu0 %v2396_v42  ;;  %1352 = vmatpush1.bf16.msra.mxu1 %v2444_v43  ;;  %v2485_v42 = vld [vmem:[%s3301_s5 + $0x254] ss:$8 sps:$4 sm:$0xff]   ;;  %v1383_v43 = vld [vmem:[#allocation5 + $0x8] sm:$0x7] }
 0x2dd   : > { %1152 = vmatprep.subr.bf16.mxu0 %v2401_v44  ;;  %1353 = vmatprep.subr.bf16.mxu1 %v2449_v46  ;;  %v2483_v44 = vld [vmem:[%s3301_s5 + $0x250] ss:$8 sps:$4 sm:$0xff]   ;;  %v2491_v46 = vld [vmem:[%s3301_s5 + $0x234] ss:$8 sps:$4 sm:$0xff]  }
 0x2e0   : > { %1153 = vmatpush1.bf16.msra.mxu0 %v2399_v48  ;;  %1354 = vmatpush1.bf16.msra.mxu1 %v2447_v49  ;;  %v2489_v48 = vld [vmem:[%s3301_s5 + $0x230] ss:$8 sps:$4 sm:$0xff]   ;;  %v2494_v49 = vld [vmem:[%s3301_s5 + $0x224] ss:$8 sps:$4 sm:$0xff]  }
 0x2e1   : > { %1154 = vmatprep.subr.bf16.mxu0 %v2404_v50  ;;  %1355 = vmatprep.subr.bf16.mxu1 %v2452_v52  ;;  %v2492_v50 = vld [vmem:[%s3301_s5 + $0x220] ss:$8 sps:$4 sm:$0xff]   ;;  %v2497_v52 = vld [vmem:[%s3301_s5 + $0x214] ss:$8 sps:$4 sm:$0xff]  }
 0x2e4   : > { %1155 = vmatpush1.bf16.msra.mxu0 %v2402_v53  ;;  %1356 = vmatpush1.bf16.msra.mxu1 %v2450_v54  ;;  %v2495_v53 = vld [vmem:[%s3301_s5 + $0x210] ss:$8 sps:$4 sm:$0xff]   ;;  %v2500_v54 = vld [vmem:[%s3301_s5 + $0x204] ss:$8 sps:$4 sm:$0xff]  }
 0x2e5   : > { %1156 = vmatprep.subr.bf16.mxu0 %v2407_v55  ;;  %1357 = vmatprep.subr.bf16.mxu1 %v2455_v56  ;;  %v2498_v55 = vld [vmem:[%s3301_s5 + $0x200] ss:$8 sps:$4 sm:$0xff]   ;;  %v2503_v56 = vld [vmem:[%s3301_s5 + $0x2f4] ss:$8 sps:$4 sm:$0xff]  }
 0x2e8   : > { %1157 = vmatpush2.bf16.msra.mxu0 %v2405_v57  ;;  %1358 = vmatpush2.bf16.msra.mxu1 %v2453_v58  ;;  %v2501_v57 = vld [vmem:[%s3301_s5 + $0x2f0] ss:$8 sps:$4 sm:$0xff]   ;;  %v2506_v58 = vld [vmem:[%s3301_s5 + $0x2e4] ss:$8 sps:$4 sm:$0xff]  }
 0x2e9   : > { %1158 = vmatprep.subr.bf16.mxu0 %v2410_v59  ;;  %1359 = vmatprep.subr.bf16.mxu1 %v2458_v60  ;;  %v2504_v59 = vld [vmem:[%s3301_s5 + $0x2e0] ss:$8 sps:$4 sm:$0xff]   ;;  %v2509_v60 = vld [vmem:[%s3301_s5 + $0x2d4] ss:$8 sps:$4 sm:$0xff]  }
 0x2ec   : > { %1159 = vmatpush2.bf16.msra.mxu0 %v2408_v61  ;;  %1360 = vmatpush2.bf16.msra.mxu1 %v2456_v62  ;;  %v2507_v61 = vld [vmem:[%s3301_s5 + $0x2d0] ss:$8 sps:$4 sm:$0xff]   ;;  %v2512_v62 = vld [vmem:[%s3301_s5 + $0x2c4] ss:$8 sps:$4 sm:$0xff]  }
 0x2ed   : > { %1160 = vmatprep.subr.bf16.mxu0 %v2413_v63  ;;  %1361 = vmatprep.subr.bf16.mxu1 %v2461_v1  ;;  %v2510_v63 = vld [vmem:[%s3301_s5 + $0x2c0] ss:$8 sps:$4 sm:$0xff]   ;;  %v2515_v1 = vld [vmem:[%s3301_s5 + $0x2b4] ss:$8 sps:$4 sm:$0xff]  }
 0x2f0   : > { %1161 = vmatpush2.bf16.msra.mxu0 %v2411_v2  ;;  %1362 = vmatpush2.bf16.msra.mxu1 %v2459_v3  ;;  %v2513_v2 = vld [vmem:[%s3301_s5 + $0x2b0] ss:$8 sps:$4 sm:$0xff]   ;;  %v2518_v3 = vld [vmem:[%s3301_s5 + $0x2a4] ss:$8 sps:$4 sm:$0xff]  }
 0x2f1   : > { %1162 = vmatprep.subr.bf16.mxu0 %v2416_v4  ;;  %1363 = vmatprep.subr.bf16.mxu1 %v2464_v5  ;;  %v2516_v4 = vld [vmem:[%s3301_s5 + $0x2a0] ss:$8 sps:$4 sm:$0xff]   ;;  %v2521_v5 = vld [vmem:[%s3301_s5 + $0x294] ss:$8 sps:$4 sm:$0xff]  }
 0x2f4   : > { %1163 = vmatpush2.bf16.msra.mxu0 %v2414_v6  ;;  %1364 = vmatpush2.bf16.msra.mxu1 %v2462_v7  ;;  %v2519_v6 = vld [vmem:[%s3301_s5 + $0x290] ss:$8 sps:$4 sm:$0xff]   ;;  %v2524_v7 = vld [vmem:[%s3301_s5 + $0x284] ss:$8 sps:$4 sm:$0xff]  }
 0x2f5   : > { %1164 = vmatprep.subr.bf16.mxu0 %v2419_v8  ;;  %1365 = vmatprep.subr.bf16.mxu1 %v2467_v9  ;;  %v2522_v8 = vld [vmem:[%s3301_s5 + $0x280] ss:$8 sps:$4 sm:$0xff]  }
 0x2f6   : > { %v1733_v9 = vld [vmem:[#allocation7 + $0xf8] sm:$0xff] }
 0x2f8   : > { %1165 = vmatpush2.bf16.msra.mxu0 %v2417_v10  ;;  %1366 = vmatpush2.bf16.msra.mxu1 %v2465_v11  ;;  %v1717_v10 = vld [vmem:[#allocation7 + $0x78] sm:$0xff]  ;;  %v1732_v11 = vld [vmem:[#allocation7 + $0xf0] sm:$0xff] }
 0x2f9   : > { %1166 = vmatprep.subr.bf16.mxu0 %v2422_v12  ;;  %1367 = vmatprep.subr.bf16.mxu1 %v2470_v13 }
 0x2fc   : > { %1167 = vmatpush2.bf16.msra.mxu0 %v2420_v15  ;;  %1368 = vmatpush2.bf16.msra.mxu1 %v2468_v17 }
 0x2fd   : > { %1168 = vmatprep.subr.bf16.mxu0 %v2425_v18  ;;  %1369 = vmatprep.subr.bf16.mxu1 %v2473_v20 }
 0x300   : > { %1169 = vmatpush2.bf16.msra.mxu0 %v2423_v21  ;;  %1370 = vmatpush2.bf16.msra.mxu1 %v2471_v22 }
 0x301   : > { %1170 = vmatprep.subr.bf16.mxu0 %v2428_v23  ;;  %1371 = vmatprep.subr.bf16.mxu1 %v2476_v25 }
 0x304   : > { %1171 = vmatpush2.bf16.msra.mxu0 %v2426_v24  ;;  %1372 = vmatpush2.bf16.msra.mxu1 %v2474_v26 }
 0x305   : > { %1401 = vmatprep.subr.bf16.mxu0 %v2917_v16  ;;  %1623 = vmatprep.subr.bf16.mxu1 %v2479_v27 }
 0x387   : > { %v858_v28 = vpop.f32.mrf.mxu0  ;;  %v938_v29 = vpop.f32.mrf.mxu1 }
 0x388   : > { %v865_v30 = vpack.c.bf16 %v858_v28, %v858_v28  ;;  %v945_v34 = vpack.c.bf16 %v938_v29, %v938_v29 }
 0x389   : > { %v860_v31 = vpop.f32.mrf.mxu0  ;;  %v940_v16 = vpop.f32.mrf.mxu1 }
 0x38a   : > { %v866_v32 = vpack.c.bf16 %v860_v31, %v860_v31  ;;  %v946_v33 = vpack.c.bf16 %v940_v16, %v940_v16  ;;  %v1716_v31 = vld [vmem:[#allocation7 + $0x70] sm:$0xff]  ;;  %v1731_v16 = vld [vmem:[#allocation7 + $0xe8] sm:$0xff] }
 0x38b   : > { %v942_v35 = vpop.f32.mrf.mxu1  ;;  %v862_v36 = vpop.f32.mrf.mxu0 }
 0x38c   : > { %1172 = vmatprep.mubr.bf16.mxu0 %v946_v33  ;;  %1373 = vmatprep.mubr.bf16.mxu1 %v866_v32  ;;  %v1715_v32 = vld [vmem:[#allocation7 + $0x68] sm:$0xff]  ;;  %v1730_v33 = vld [vmem:[#allocation7 + $0xe0] sm:$0xff]  ;;  %v1729_v35 = vld [vmem:[#allocation7 + $0xd8] sm:$0xff] }
 0x38d   : > { %v943_v39 = vpop.f32.mrf.mxu1  ;;  %1173 = vmatmul.mubr.bf16.vlgmr.msra.gmra.mxu0 %v945_v34  ;;  %1374 = vmatmul.mubr.bf16.vlgmr.msra.gmra.mxu1 %v865_v30  ;;  %v863_v40 = vpop.f32.mrf.mxu0  ;;  %v1714_v34 = vld [vmem:[#allocation7 + $0x60] sm:$0xff]  ;;  %v1713_v36 = vld [vmem:[#allocation7 + $0x58] sm:$0xff] }
 0x38e   : > { %1402 = vmatpush1.bf16.msra.mxu0 %v2925_v19  ;;  %1419 = vmatprep.mubr.bf16.mxu0 %v2686_v14  ;;  %v2488_v14 = vld [vmem:[%s3301_s5 + $0x244] ss:$8 sps:$4 sm:$0xff]   ;;  %v2486_v19 = vld [vmem:[%s3301_s5 + $0x240] ss:$8 sps:$4 sm:$0xff]  }
 0x38f   : > { %1624 = vmatpush1.bf16.msra.mxu1 %v2477_v37  ;;  %2206 = vmatprep.subr.mxu0 %v1733_v9  ;;  %v1728_v37 = vld [vmem:[#allocation7 + $0xd0] sm:$0xff]  ;;  %v1727_v39 = vld [vmem:[#allocation7 + $0xc8] sm:$0xff] }
 0x390   : > { %1625 = vmatprep.subr.bf16.mxu1 %v2482_v38  ;;  %v1712_v38 = vld [vmem:[#allocation7 + $0x50] sm:$0xff]  ;;  %v1711_v40 = vld [vmem:[#allocation7 + $0x48] sm:$0xff] }
 0x393   : > { %1626 = vmatpush1.bf16.msra.mxu1 %v2480_v41  ;;  %v1726_v41 = vld [vmem:[#allocation7 + $0xc0] sm:$0xff] }
 0x394   : > { %1627 = vmatprep.subr.bf16.mxu1 %v2485_v42  ;;  %v1710_v42 = vld [vmem:[#allocation7 + $0x40] sm:$0xff] }
 0x395   : > { %2128 = vmatmul.mubr.msk.bf16.vlgmr.msra.gmra.mxu0 %vm810_vm6, %v1383_v43  ;;  %v1725_v43 = vld [vmem:[#allocation7 + $0xb8] sm:$0xff] }
 0x396   : > { %2207 = vmatpush3.msra.mxu0 %v1717_v10 }
 0x397   : > { %1628 = vmatpush1.bf16.msra.mxu1 %v2483_v44  ;;  %2208 = vmatprep.subr.mxu0 %v1732_v11  ;;  %v1709_v44 = vld [vmem:[#allocation7 + $0x38] sm:$0xff] }
 0x398   : > { %1629 = vmatprep.subr.bf16.mxu1 %v2488_v14  ;;  %2209 = vmatpush3.msra.mxu0 %v1716_v31  ;;  %v1724_v14 = vld [vmem:[#allocation7 + $0xb0] sm:$0xff] }
 0x399   : > { %2210 = vmatprep.subr.mxu0 %v1731_v16  ;;  %v1813_v31 = vld [vmem:[%s3304_s8 + $0x10] sm:$0xff]  ;;  %v1812_v16 = vld [vmem:[%s3304_s8 + $0x8] sm:$0xff] }
 0x39a   : > { %2211 = vmatpush3.msra.mxu0 %v1715_v32  ;;  %v1811_v32 = vld [vmem:[%s3304_s8] sm:$0xff] }
 0x39b   : > { %1630 = vmatpush1.bf16.msra.mxu1 %v2486_v19  ;;  %2212 = vmatprep.subr.mxu0 %v1730_v33  ;;  %v1708_v19 = vld [vmem:[#allocation7 + $0x30] sm:$0xff] }
 0x39c   : > { %1631 = vmatprep.subr.bf16.mxu1 %v2491_v46  ;;  %2213 = vmatpush3.msra.mxu0 %v1714_v34  ;;  %v1723_v46 = vld [vmem:[#allocation7 + $0xa8] sm:$0xff] }
 0x39d   : > { %2214 = vmatprep.subr.mxu0 %v1729_v35 }
 0x39e   : > { %2215 = vmatpush3.msra.mxu0 %v1713_v36 }
 0x39f   : > { %1632 = vmatpush1.bf16.msra.mxu1 %v2489_v48  ;;  %2216 = vmatprep.subr.mxu0 %v1728_v37  ;;  %v1707_v48 = vld [vmem:[#allocation7 + $0x28] sm:$0xff] }
 0x3a0   : > { %1633 = vmatprep.subr.bf16.mxu1 %v2494_v49  ;;  %2217 = vmatpush3.msra.mxu0 %v1712_v38  ;;  %v1722_v49 = vld [vmem:[#allocation7 + $0xa0] sm:$0xff] }
 0x3a1   : > { %2218 = vmatprep.subr.mxu0 %v1727_v39 }
 0x3a2   : > { %2219 = vmatpush3.msra.mxu0 %v1711_v40 }
 0x3a3   : > { %1634 = vmatpush1.bf16.msra.mxu1 %v2492_v50  ;;  %2220 = vmatprep.subr.mxu0 %v1726_v41  ;;  %v1706_v50 = vld [vmem:[#allocation7 + $0x20] sm:$0xff] }
 0x3a4   : > { %1635 = vmatprep.subr.bf16.mxu1 %v2497_v52  ;;  %2221 = vmatpush3.msra.mxu0 %v1710_v42  ;;  %v1721_v52 = vld [vmem:[#allocation7 + $0x98] sm:$0xff] }
 0x3a5   : > { %2222 = vmatprep.subr.mxu0 %v1725_v43 }
 0x3a6   : > { %2223 = vmatpush3.msra.mxu0 %v1709_v44 }
 0x3a7   : > { %1636 = vmatpush1.bf16.msra.mxu1 %v2495_v53  ;;  %2224 = vmatprep.subr.mxu0 %v1724_v14  ;;  %v1705_v53 = vld [vmem:[#allocation7 + $0x18] sm:$0xff] }
 0x3a8   : > { %1637 = vmatprep.subr.bf16.mxu1 %v2500_v54  ;;  %2225 = vmatpush3.msra.mxu0 %v1708_v19  ;;  %v1720_v54 = vld [vmem:[#allocation7 + $0x90] sm:$0xff] }
 0x3a9   : > { %2226 = vmatprep.subr.mxu0 %v1723_v46 }
 0x3aa   : > { %2227 = vmatpush3.msra.mxu0 %v1707_v48 }
 0x3ab   : > { %1638 = vmatpush1.bf16.msra.mxu1 %v2498_v55  ;;  %2228 = vmatprep.subr.mxu0 %v1722_v49  ;;  %v1704_v55 = vld [vmem:[#allocation7 + $0x10] sm:$0xff] }
 0x3ac   : > { %1639 = vmatprep.subr.bf16.mxu1 %v2503_v56  ;;  %2229 = vmatpush3.msra.mxu0 %v1706_v50  ;;  %v1719_v56 = vld [vmem:[#allocation7 + $0x88] sm:$0xff] }
 0x3ad   : > { %2230 = vmatprep.subr.mxu0 %v1721_v52 }
 0x3ae   : > { %2231 = vmatpush3.msra.mxu0 %v1705_v53 }
 0x3af   : > { %1640 = vmatpush2.bf16.msra.mxu1 %v2501_v57  ;;  %2232 = vmatprep.subr.mxu0 %v1720_v54  ;;  %v1703_v57 = vld [vmem:[#allocation7 + $0x8] sm:$0xff] }
 0x3b0   : > { %1641 = vmatprep.subr.bf16.mxu1 %v2506_v58  ;;  %2233 = vmatpush3.msra.mxu0 %v1704_v55  ;;  %v1718_v58 = vld [vmem:[#allocation7 + $0x80] sm:$0xff] }
 0x3b1   : > { %2234 = vmatprep.subr.mxu0 %v1719_v56 }
 0x3b2   : > { %2235 = vmatpush3.msra.mxu0 %v1703_v57 }
 0x3b3   : > { %1642 = vmatpush2.bf16.msra.mxu1 %v2504_v59  ;;  %v1702_v59 = vld [vmem:[#allocation7] sm:$0xff]  ;;  %2236 = vmatprep.subr.mxu0 %v1718_v58 }
 0x3b4   : > { %1643 = vmatprep.subr.bf16.mxu1 %v2509_v60  ;;  %2237 = vmatpush3.msra.mxu0 %v1702_v59  ;;  %v1666_v60 = vld [vmem:[%s3302_s6] sm:$0x3] }
 0x3b5   : > { %2270 = vmatprep.subr.mxu0 %v2684_v0 }
 0x3b7   : > { %1644 = vmatpush2.bf16.msra.mxu1 %v2507_v61  ;;  %v1671_v61 = vrot.slane %v1666_v60, %v791_v47 }
 0x3b8   : > { %1645 = vmatprep.subr.bf16.mxu1 %v2512_v62 }
 0x3bb   : > { %1646 = vmatpush2.bf16.msra.mxu1 %v2510_v63 }
 0x3bc   : > { %1647 = vmatprep.subr.bf16.mxu1 %v2515_v1  ;;  %v1675_v1 = vrot.slane %v1666_v60, %v795_v51 }
 0x3bf   : > { %1648 = vmatpush2.bf16.msra.mxu1 %v2513_v2 }
 0x3c0   : > { %1649 = vmatprep.subr.bf16.mxu1 %v2518_v3 }
 0x3c3   : > { %1650 = vmatpush2.bf16.msra.mxu1 %v2516_v4 }
 0x3c4   : > { %1651 = vmatprep.subr.bf16.mxu1 %v2521_v5 }
 0x3c7   : > { %1652 = vmatpush2.bf16.msra.mxu1 %v2519_v6 }
 0x3c8   : > { %1653 = vmatprep.subr.bf16.mxu1 %v2524_v7 }
 0x3cb   : > { %1654 = vmatpush2.bf16.msra.mxu1 %v2522_v8 }
 0x44d   : > { %v1174_v12 = vpop.f32.mrf.mxu0  ;;  %v1375_v13 = vpop.f32.mrf.mxu1 }
 0x44e   : > { %v3219_v15 = vadd.f32 %v1375_v13, %v1174_v12 }
 0x44f   : > { %v1176_v17 = vpop.f32.mrf.mxu0  ;;  %v1377_v18 = vpop.f32.mrf.mxu1 }
 0x450   : > { %v3221_v20 = vadd.f32 %v1377_v18, %v1176_v17 }
 0x451   : > { %v1178_v21 = vpop.f32.mrf.mxu0  ;;  %v1379_v22 = vpop.f32.mrf.mxu1 }
 0x453   : > { %v1179_v23 = vpop.f32.mrf.mxu0  ;;  %v1380_v24 = vpop.f32.mrf.mxu1 }
 0x455   : > { %v1421_v25 = vpop.f32.mrf.mxu0 }
 0x456   : > { %v1428_v28 = vpack.c.bf16 %v1421_v25, %v1421_v25 }
 0x457   : > { %v1423_v26 = vpop.f32.mrf.mxu0 }
 0x458   : > { %v1429_v27 = vpack.c.bf16 %v1423_v26, %v1423_v26 }
 0x459   : > { %v1425_v29 = vpop.f32.mrf.mxu0 }
 0x45a   : > { %1655 = vmatprep.mubr.bf16.mxu1 %v1429_v27 }
 0x45b   : > { %v1426_v30 = vpop.f32.mrf.mxu0  ;;  %1656 = vmatmul.mubr.bf16.vlgmr.msra.gmra.mxu1 %v1428_v28 }
 0x45c   : > { %v1814_v30 = vld [vmem:[%s3304_s8 + $0x18] sm:$0xff] }
 0x51b   : > { %v1657_v62 = vpop.f32.mrf.mxu1 }
 0x51c   : > { %v1664_v63 = vadd.f32 %v1657_v62, %v3219_v15 }
 0x51d   : > { %v1659_v2 = vpop.f32.mrf.mxu1 }
 0x51e   : > { %v1678_v3 = vadd.f32 %v1671_v61, %v1664_v63  ;;  %v1665_v4 = vadd.f32 %v1659_v2, %v3221_v20 }
 0x51f   : > { %v1661_v5 = vpop.f32.mrf.mxu1 }
 0x520   : > { %v1680_v6 = vmax.f32 %v1678_v3, 0.0  ;;  %v1679_v7 = vadd.f32 %v1675_v1, %v1665_v4 }
 0x521   : > { %v1662_v8 = vpop.f32.mrf.mxu1 }
 0x522   : > { %v1682_v9 = vmax.f32 %v1680_v6, 1e-06  ;;  %v1681_v10 = vmax.f32 %v1679_v7, 0.0 }
 0x524   : > { %v1684_v11 = vmul.f32 %v1682_v9, %v1682_v9  ;;  %v1683_v12 = vmax.f32 %v1681_v10, 1e-06 }
 0x526   : > { %v1686_v13 = vmul.f32 %v1684_v11, %v1682_v9  ;;  %v1685_v47 = vmul.f32 %v1683_v12, %v1683_v12 }
 0x528   : > { %v1688_v17 = vsel %vm815_vm5, %v1686_v13, 0.0  ;;  %v1687_v15 = vmul.f32 %v1685_v47, %v1683_v12 }
 0x529   : > { %v1689_v18 = vrot.slane %v1688_v17, 4 }
 0x52a   : > { %v1695_v45 = vsel %vm815_vm5, %v1687_v15, 0.0 }
 0x52b   : > { %v1690_v51 = vadd.f32 %v1689_v18, %v1688_v17  ;;  %v1696_v21 = vrot.slane %v1695_v45, 4 }
 0x52d   : > { %v1691_v22 = vrot.slane %v1690_v51, 2  ;;  %v1697_v20 = vadd.f32 %v1696_v21, %v1695_v45 }
 0x52f   : > { %v1698_v23 = vrot.slane %v1697_v20, 2  ;;  %v1692_v24 = vadd.f32 %v1691_v22, %v1690_v51 }
 0x531   : > { %v1699_v25 = vadd.f32 %v1698_v23, %v1697_v20  ;;  %v1693_v26 = vrot.slane %v1692_v24, 1 }
 0x533   : > { %v1700_v27 = vrot.slane %v1699_v25, 1  ;;  %v1694_v29 = vadd.f32 %v1693_v26, %v1692_v24 }
 0x535   : > { %v1701_v28 = vadd.f32 %v1700_v27, %v1699_v25 }
 0x537   : > { %1798 = vmatprep.mubr.f32.mxu0 %v1701_v28 }
 0x538   : > { %1799 = vmatmul.mubr.f32.vlgmr.msra.gmra.mxu0 %v1694_v29 }
 0x539   : > { %2278 = vmatprep.mubr.msk.f32.mxu0 %vm2685_vm0, %v2684_v0  ;;  %2271 = vmatpush3.msra.mxu0 %v1814_v30 }
 0x53a   : > { %2272 = vmatprep.subr.mxu0 %v2684_v0 }
 0x53b   : > { %2273 = vmatpush3.msra.mxu0 %v1813_v31 }
 0x53c   : > { %2274 = vmatprep.subr.mxu0 %v2684_v0 }
 0x53d   : > { %2275 = vmatpush3.msra.mxu0 %v1812_v16 }
 0x53e   : > { %2276 = vmatprep.subr.mxu0 %v2684_v0  ;;  %v1815_v0 = vld [vmem:[%s3305_s9] sm:$0x1] }
 0x53f   : > { %2277 = vmatpush3.msra.mxu0 %v1811_v32 }
 0x5f8   : > { %v2238_v33 = vpop.f32.mrf.mxu0 }
 0x5fa   : > { %v2239_v34 = vpop.f32.mrf.mxu0 }
 0x5fb   : > { %v2240_v35 = vadd.f32 %v2239_v34, %v2238_v33 }
 0x5fd   : > { %v1804_v36 = vmul.f32 0.025, %v2240_v35 }
 0x5ff   : > { %2525 = vlog2.f32 %v1804_v36 }
 0x60c   : > { %v2526_v37 = vpop.eup %2525 }
 0x60d   : > { %v1806_v38 = vmul.f32 0.6931472, %v2526_v37 }
 0x60f   : > { %v1807_v39 = vmul.f32 0.33333334, %v1806_v38 }
 0x611   : > { %v1808_v40 = vmul.f32 1.442695, %v1807_v39 }
 0x613   : > { %2527 = vpow2.f32 %v1808_v40 }
 0x620   : > { %v2528_v41 = vpop.eup %2527 }
 0x621   : > { %v1810_v42 = vmax.f32 %v2528_v41, 0.0 }
 0x623   : > { %2279 = vmatmul.mubr.msk.f32.vlgmr.msra.gmra.mxu0 %vm546_vm3, %v1810_v42 }
 0x6e3   : > { %v1885_v43 = vpop.f32.mrf.mxu0 }
 0x6e4   : > { %v1886_v44 = vadd.f32 %v1885_v43, %v1815_v0 }
 0x6e5   : > { %v2280_v14 = vpop.f32.mrf.mxu0 }
 0x6e6   : > { %1890 = vst.msk [vmem:[%s395_s29] sm:$0x1] %vm1889_vm7, %v1886_v44 }
 0x6e7   : > { %2620 = shalt.err (!%p2617_p0)
}
 0x6e8   : > { %s2621_s27 = scalar_lea.hbm %s3261_s28, 16  ;;  %s2625_s29 = scalar_lea.hbm %s3306_s10, 32 }
 0x6e9   : > { %p2622_p6 = scmp.ne.s32.totalorder %s3261_s28, %s2621_s27  ;;  %p2626_p5 = scmp.lt.s32.totalorder %s3261_s28, %s3306_s10 }
 0x6ea   : > { %p2627_p1 = scmp.lt.s32.totalorder %s2625_s29, %s2621_s27 }
 0x6eb   : > { %p2623_p9 = pnand %p2622_p6, %p3318_p12 }
 0x6ec   : > { %p2628_p3 = por %p2627_p1, %p2626_p5 }
 0x6ed   : > { %p2624_p13 = pneg %p2623_p9 }
 0x6ef   : > { %p2629_p10 = pnand %p2628_p3, %p2624_p13 }
 0x6f1   : > { %2632 = shalt.err (!%p2629_p10)
}
 0x6f2   : > { %2294 = dma.vmem_to_hbm [thread:$0]  (%p3318_p12), %s1905_s11, 16, %s3261_s28, %s1892_s30  }
 0x6f3 PF: > { %p2316_p2 = scmp.ge.s32.totalorder %s2675_s16, 2  ;;  %s1916_s12 = sand.u32 1, %s2663_s13  }
 0x6f4   : > { %p3319_p4 = scmp.ne.s32.totalorder %s3311_s24, 0  ;;  %s1917_s17 = scalar_lea.sflag [#allocation4], %s1916_s12 }
 0x6f6   : > { %p2307_p7 = pnand %p2316_p2, %p3319_p4 }
 0x6f8   : > { %p2308_p8 = pneg %p2307_p7 }
 0x6fa   : > { %2658 = dma.done.wait (%p2308_p8), %s1917_s17, 16  }
 0x6fb   : > { %2660 = vsyncadd (%p2308_p8), %s1917_s17, 4294967280  ;;  %s3320_s20 = sld [smem:[#allocation12_spill]]  ;;  %p22_p11 = scmp.ge.s32.totalorder %s2769_s19, 4  }
 0x6fc   : > { %s3321_s13 = smov %s2667_s14  ;;  %s3322_s14 = smov %s2671_s15 }
 0x6fd   : > { %s3324_s16 = smov %s2769_s19  ;;  %24 = sbr.rel (!%p22_p11) target bundleno = 5 (0x5), region = 116 }
 0x701   : > { %s3323_s15 = smov %s3320_s20 }
 0x702   :  { %1921 = vsyncpa [#allocation3], 1 }
 0x703   :  { %1923 = vsyncpa [#allocation3 + $0x1], 1 }
 0x704   :  { %1924 = vsyncpa [#allocation6], 1 }
 0x705   :  { %1925 = vsyncpa [#allocation4], 1 }
 0x706   :  { %1927 = vsyncpa [#allocation4 + $0x1], 1 }

</bundles_post_ra>
